<compile_context>
chip_gen: v7x
topology: tpu7x:2x2x1
jax: 0.10.0
libtpu: 0.0.40
codegen_flags: <defaults>
</compile_context>

<pallas_src>
import jax
import jax.numpy as jnp
from jax.experimental import pallas as pl
from jax.experimental.pallas import tpu as pltpu

# matrix-exponential approximation parameters
_TAYLOR_ORDER = 12      # Taylor order on the scaled matrix (||a|| <= _THETA)
_THETA = 1.0            # target norm after scaling; truncation ~ 1/13! ~ 1.6e-10
_MAX_SQUARINGS = 16     # covers ||skew||_inf up to _THETA * 2^16

_VMEM_LIMIT_BYTES = 64 * 1024 * 1024   # <= v7x physical VMEM; ample on v5e/v6e


def _expm_kernel(mat_ref, w_ref):
    """W = expm(triu(mat) - triu(mat)^T) on a single (n, n) block."""
    n = mat_ref.shape[0]
    m = mat_ref[...].astype(jnp.float32)

    row = jax.lax.broadcasted_iota(jnp.int32, (n, n), 0)
    col = jax.lax.broadcasted_iota(jnp.int32, (n, n), 1)

    # skew-symmetric part: triu(m) - triu(m)^T (diagonal cancels to 0)
    upper = jnp.where(col >= row, m, 0.0)
    skew = upper - jnp.transpose(upper)
    eye = jnp.where(row == col, 1.0, 0.0).astype(jnp.float32)

    # norm-adaptive scaling: smallest s with ||skew||_inf * 2^-s <= _THETA.
    # (kept as (1,1) arrays; the squaring count must match the halvings, so the
    #  same thresholds gate both the scale and the conditional squarings.)
    norm = jnp.max(jnp.sum(jnp.abs(skew), axis=-1, keepdims=True),
                   axis=0, keepdims=True)                       # (1, 1)
    scale = jnp.ones((1, 1), jnp.float32)
    conds = []
    for i in range(_MAX_SQUARINGS):
        c = norm > (_THETA * (2.0 ** i))                        # (1, 1) bool
        conds.append(c)
        scale = jnp.where(c, scale * 0.5, scale)
    a = skew * scale

    # Taylor via Horner:  exp(a) ~= I + a(I + a/2(I + a/3(...)))
    acc = eye
    for k in range(_TAYLOR_ORDER, 0, -1):
        acc = eye + jnp.dot(a, acc, preferred_element_type=jnp.float32) * (1.0 / k)

    # conditional squarings:  exp(skew) = exp(a)^(2^s)
    for c in conds:
        sq = jnp.dot(acc, acc, preferred_element_type=jnp.float32)
        acc = jnp.where(c, sq, acc)

    w_ref[...] = acc.astype(w_ref.dtype)


def _linear_kernel(w_ref, bias_ref, x_ref, o_ref):
    """Per row-tile:  out = x @ W + bias (compute-dtype MXU feed, f32 accum)."""
    x_tile = x_ref[...].astype(w_ref.dtype)          # in-register cast (bf16 feed)
    acc = jnp.dot(x_tile, w_ref[...], preferred_element_type=jnp.float32)
    o_ref[...] = (acc + bias_ref[...]).astype(o_ref.dtype)


def _pick_tile_m(m_rows, n, x_bytes, out_bytes, w_bytes):
    """Largest row tile whose double-buffered x/out tiles + resident W fit VMEM."""
    budget = 40 * 1024 * 1024                     # headroom under _VMEM_LIMIT_BYTES
    resident = n * n * w_bytes + 4 * n            # single-buffered W + bias
    per_row = 2 * n * (x_bytes + out_bytes)       # double-buffered x + out tiles
    avail = max(budget - resident, 8 * per_row)
    tile_m = int(min(1024, avail // per_row))
    tile_m = max(8, (tile_m // 8) * 8)
    if m_rows <= tile_m:
        return m_rows                             # one block covering all rows
    return tile_m


def son_linear(x, mat, bias, *, compute_dtype=jnp.bfloat16, out_dtype=None):
    """x: (..., n); mat: (n, n); bias: (n,). Returns (..., n) in out_dtype."""
    n = mat.shape[0]
    lead = x.shape[:-1]
    out_dtype = x.dtype if out_dtype is None else out_dtype
    x2d = x.reshape(-1, n)                        # contiguous reshape: no HBM copy
    m_rows = x2d.shape[0]

    # ---- kernel 1: orthogonal weight W = expm(skew), computed once ----------
    w = pl.pallas_call(
        _expm_kernel,
        out_shape=jax.ShapeDtypeStruct((n, n), compute_dtype),
        in_specs=[pl.BlockSpec(memory_space=pltpu.MemorySpace.VMEM)],
        out_specs=pl.BlockSpec(memory_space=pltpu.MemorySpace.VMEM),
        compiler_params=pltpu.CompilerParams(
            vmem_limit_bytes=_VMEM_LIMIT_BYTES),
    )(mat)

    bias2d = bias.astype(jnp.float32).reshape(1, n)   # tiny; bias added in f32

    tile_m = _pick_tile_m(
        m_rows, n,
        jnp.dtype(x.dtype).itemsize,
        jnp.dtype(out_dtype).itemsize,
        jnp.dtype(compute_dtype).itemsize,
    )
    grid = (pl.cdiv(m_rows, tile_m),)             # ragged last tile is clamped

    # ---- kernel 2: streaming x @ W + bias, row-tiled, auto-pipelined --------
    out2d = pl.pallas_call(
        _linear_kernel,
        out_shape=jax.ShapeDtypeStruct((m_rows, n), out_dtype),
        grid=grid,
        in_specs=[
            # W and bias: whole-array, single-buffered VMEM residents
            pl.BlockSpec(memory_space=pltpu.MemorySpace.VMEM),
            pl.BlockSpec(memory_space=pltpu.MemorySpace.VMEM),
            # x: row-tiled, double-buffered by the pipeline
            pl.BlockSpec((tile_m, n), lambda i: (i, 0)),
        ],
        out_specs=pl.BlockSpec((tile_m, n), lambda i: (i, 0)),
        compiler_params=pltpu.CompilerParams(
            dimension_semantics=("parallel",),
            vmem_limit_bytes=_VMEM_LIMIT_BYTES,
        ),
    )(w, bias2d, x2d)

    return out2d.reshape(*lead, n)


def _reference(x, mat, bias):
    """Pure-JAX reference of the PyTorch forward (high-precision matmuls)."""
    with jax.default_matmul_precision("float32"):
        upper = jnp.triu(mat)
        skew = upper - upper.T
        w = jax.scipy.linalg.expm(skew)
        return x @ w + bias


if __name__ == "__main__":
    n = 32               # hidden size
    batch, seq = 2, 8

    key = jax.random.PRNGKey(0)
    k_mat, k_x = jax.random.split(key)

    # deterministic parameter init (mimics torch.randn(n, n)); bias is zeros
    mat = jax.random.normal(k_mat, (n, n), dtype=jnp.float32)
    bias = jnp.zeros((n,), dtype=jnp.float32)
    x = jax.random.normal(k_x, (batch, seq, n), dtype=jnp.float32)

    ref = _reference(x, mat, bias)

    # f32-feed path: checked against the high-precision reference
    out_f32 = son_linear(x, mat, bias, compute_dtype=jnp.float32)
    jax.block_until_ready(out_f32)
    assert out_f32.shape == ref.shape
    assert jnp.allclose(out_f32, ref, rtol=1e-2, atol=1e-2), "f32 path mismatch"

    # default bf16-MXU-feed path: tolerance commensurate with bf16 inputs
    out_bf16 = son_linear(x, mat, bias)
    jax.block_until_ready(out_bf16)
    assert out_bf16.shape == ref.shape
    assert jnp.allclose(out_bf16, ref, rtol=4e-2, atol=4e-2), "bf16 path mismatch"

    print("KERNEL_OK")
</pallas_src>

<mosaic_0001>
module attributes {stable_mosaic.version = 11 : i64} {
  func.func @_expm_kernel(%arg0: memref<32x32xf32, #tpu.memory_space<vmem>>, %arg1: memref<32x32xf32, #tpu.memory_space<vmem>>) attributes {dimension_semantics = [], scalar_prefetch = 0 : i64, scratch_operands = 0 : i64, tpu.core_type = #tpu.core_type<tc>} {
    %c0 = arith.constant 0 : index
    %c0_0 = arith.constant 0 : index
    %0 = vector.load %arg0[%c0, %c0_0] : memref<32x32xf32, #tpu.memory_space<vmem>>, vector<32x32xf32>
    %1 = tpu.iota {dimensions = array<i32: 0>} : vector<32x32xi32>
    %2 = tpu.iota {dimensions = array<i32: 1>} : vector<32x32xi32>
    %3 = arith.cmpi sge, %2, %1 : vector<32x32xi32>
    %cst = arith.constant 0.000000e+00 : f32
    %4 = vector.broadcast %cst : f32 to vector<32x32xf32>
    %5 = arith.select %3, %0, %4 : vector<32x32xi1>, vector<32x32xf32>
    %6 = tpu.transpose %5, [1, 0] : vector<32x32xf32> -> vector<32x32xf32>
    %7 = arith.subf %5, %6 : vector<32x32xf32>
    %8 = arith.cmpi eq, %1, %2 : vector<32x32xi32>
    %cst_1 = arith.constant 1.000000e+00 : f32
    %cst_2 = arith.constant 0.000000e+00 : f32
    %9 = vector.broadcast %cst_1 : f32 to vector<32x32xf32>
    %10 = vector.broadcast %cst_2 : f32 to vector<32x32xf32>
    %11 = arith.select %8, %9, %10 : vector<32x32xi1>, vector<32x32xf32>
    %12 = math.absf %7 : vector<32x32xf32>
    %cst_3 = arith.constant dense<0.000000e+00> : vector<32xf32>
    %13 = vector.multi_reduction <add>, %12, %cst_3 [1] : vector<32x32xf32> to vector<32xf32>
    %14 = vector.shape_cast %13 : vector<32xf32> to vector<32x1xf32>
    %cst_4 = arith.constant dense<0xFF800000> : vector<1xf32>
    %15 = vector.multi_reduction <maximumf>, %14, %cst_4 [0] : vector<32x1xf32> to vector<1xf32>
    %16 = vector.shape_cast %15 : vector<1xf32> to vector<1x1xf32>
    %cst_5 = arith.constant 1.000000e+00 : f32
    %17 = vector.broadcast %cst_5 : f32 to vector<1x1xf32>
    %cst_6 = arith.constant 1.000000e+00 : f32
    %18 = vector.broadcast %cst_6 : f32 to vector<1x1xf32>
    %19 = arith.cmpf ogt, %16, %18 : vector<1x1xf32>
    %cst_7 = arith.constant 5.000000e-01 : f32
    %20 = vector.broadcast %cst_7 : f32 to vector<1x1xf32>
    %21 = arith.mulf %17, %20 : vector<1x1xf32>
    %22 = arith.select %19, %21, %17 : vector<1x1xi1>, vector<1x1xf32>
    %cst_8 = arith.constant 2.000000e+00 : f32
    %23 = vector.broadcast %cst_8 : f32 to vector<1x1xf32>
    %24 = arith.cmpf ogt, %16, %23 : vector<1x1xf32>
    %cst_9 = arith.constant 5.000000e-01 : f32
    %25 = vector.broadcast %cst_9 : f32 to vector<1x1xf32>
    %26 = arith.mulf %22, %25 : vector<1x1xf32>
    %27 = arith.select %24, %26, %22 : vector<1x1xi1>, vector<1x1xf32>
    %cst_10 = arith.constant 4.000000e+00 : f32
    %28 = vector.broadcast %cst_10 : f32 to vector<1x1xf32>
    %29 = arith.cmpf ogt, %16, %28 : vector<1x1xf32>
    %cst_11 = arith.constant 5.000000e-01 : f32
    %30 = vector.broadcast %cst_11 : f32 to vector<1x1xf32>
    %31 = arith.mulf %27, %30 : vector<1x1xf32>
    %32 = arith.select %29, %31, %27 : vector<1x1xi1>, vector<1x1xf32>
    %cst_12 = arith.constant 8.000000e+00 : f32
    %33 = vector.broadcast %cst_12 : f32 to vector<1x1xf32>
    %34 = arith.cmpf ogt, %16, %33 : vector<1x1xf32>
    %cst_13 = arith.constant 5.000000e-01 : f32
    %35 = vector.broadcast %cst_13 : f32 to vector<1x1xf32>
    %36 = arith.mulf %32, %35 : vector<1x1xf32>
    %37 = arith.select %34, %36, %32 : vector<1x1xi1>, vector<1x1xf32>
    %cst_14 = arith.constant 1.600000e+01 : f32
    %38 = vector.broadcast %cst_14 : f32 to vector<1x1xf32>
    %39 = arith.cmpf ogt, %16, %38 : vector<1x1xf32>
    %cst_15 = arith.constant 5.000000e-01 : f32
    %40 = vector.broadcast %cst_15 : f32 to vector<1x1xf32>
    %41 = arith.mulf %37, %40 : vector<1x1xf32>
    %42 = arith.select %39, %41, %37 : vector<1x1xi1>, vector<1x1xf32>
    %cst_16 = arith.constant 3.200000e+01 : f32
    %43 = vector.broadcast %cst_16 : f32 to vector<1x1xf32>
    %44 = arith.cmpf ogt, %16, %43 : vector<1x1xf32>
    %cst_17 = arith.constant 5.000000e-01 : f32
    %45 = vector.broadcast %cst_17 : f32 to vector<1x1xf32>
    %46 = arith.mulf %42, %45 : vector<1x1xf32>
    %47 = arith.select %44, %46, %42 : vector<1x1xi1>, vector<1x1xf32>
    %cst_18 = arith.constant 6.400000e+01 : f32
    %48 = vector.broadcast %cst_18 : f32 to vector<1x1xf32>
    %49 = arith.cmpf ogt, %16, %48 : vector<1x1xf32>
    %cst_19 = arith.constant 5.000000e-01 : f32
    %50 = vector.broadcast %cst_19 : f32 to vector<1x1xf32>
    %51 = arith.mulf %47, %50 : vector<1x1xf32>
    %52 = arith.select %49, %51, %47 : vector<1x1xi1>, vector<1x1xf32>
    %cst_20 = arith.constant 1.280000e+02 : f32
    %53 = vector.broadcast %cst_20 : f32 to vector<1x1xf32>
    %54 = arith.cmpf ogt, %16, %53 : vector<1x1xf32>
    %cst_21 = arith.constant 5.000000e-01 : f32
    %55 = vector.broadcast %cst_21 : f32 to vector<1x1xf32>
    %56 = arith.mulf %52, %55 : vector<1x1xf32>
    %57 = arith.select %54, %56, %52 : vector<1x1xi1>, vector<1x1xf32>
    %cst_22 = arith.constant 2.560000e+02 : f32
    %58 = vector.broadcast %cst_22 : f32 to vector<1x1xf32>
    %59 = arith.cmpf ogt, %16, %58 : vector<1x1xf32>
    %cst_23 = arith.constant 5.000000e-01 : f32
    %60 = vector.broadcast %cst_23 : f32 to vector<1x1xf32>
    %61 = arith.mulf %57, %60 : vector<1x1xf32>
    %62 = arith.select %59, %61, %57 : vector<1x1xi1>, vector<1x1xf32>
    %cst_24 = arith.constant 5.120000e+02 : f32
    %63 = vector.broadcast %cst_24 : f32 to vector<1x1xf32>
    %64 = arith.cmpf ogt, %16, %63 : vector<1x1xf32>
    %cst_25 = arith.constant 5.000000e-01 : f32
    %65 = vector.broadcast %cst_25 : f32 to vector<1x1xf32>
    %66 = arith.mulf %62, %65 : vector<1x1xf32>
    %67 = arith.select %64, %66, %62 : vector<1x1xi1>, vector<1x1xf32>
    %cst_26 = arith.constant 1.024000e+03 : f32
    %68 = vector.broadcast %cst_26 : f32 to vector<1x1xf32>
    %69 = arith.cmpf ogt, %16, %68 : vector<1x1xf32>
    %cst_27 = arith.constant 5.000000e-01 : f32
    %70 = vector.broadcast %cst_27 : f32 to vector<1x1xf32>
    %71 = arith.mulf %67, %70 : vector<1x1xf32>
    %72 = arith.select %69, %71, %67 : vector<1x1xi1>, vector<1x1xf32>
    %cst_28 = arith.constant 2.048000e+03 : f32
    %73 = vector.broadcast %cst_28 : f32 to vector<1x1xf32>
    %74 = arith.cmpf ogt, %16, %73 : vector<1x1xf32>
    %cst_29 = arith.constant 5.000000e-01 : f32
    %75 = vector.broadcast %cst_29 : f32 to vector<1x1xf32>
    %76 = arith.mulf %72, %75 : vector<1x1xf32>
    %77 = arith.select %74, %76, %72 : vector<1x1xi1>, vector<1x1xf32>
    %cst_30 = arith.constant 4.096000e+03 : f32
    %78 = vector.broadcast %cst_30 : f32 to vector<1x1xf32>
    %79 = arith.cmpf ogt, %16, %78 : vector<1x1xf32>
    %cst_31 = arith.constant 5.000000e-01 : f32
    %80 = vector.broadcast %cst_31 : f32 to vector<1x1xf32>
    %81 = arith.mulf %77, %80 : vector<1x1xf32>
    %82 = arith.select %79, %81, %77 : vector<1x1xi1>, vector<1x1xf32>
    %cst_32 = arith.constant 8.192000e+03 : f32
    %83 = vector.broadcast %cst_32 : f32 to vector<1x1xf32>
    %84 = arith.cmpf ogt, %16, %83 : vector<1x1xf32>
    %cst_33 = arith.constant 5.000000e-01 : f32
    %85 = vector.broadcast %cst_33 : f32 to vector<1x1xf32>
    %86 = arith.mulf %82, %85 : vector<1x1xf32>
    %87 = arith.select %84, %86, %82 : vector<1x1xi1>, vector<1x1xf32>
    %cst_34 = arith.constant 1.638400e+04 : f32
    %88 = vector.broadcast %cst_34 : f32 to vector<1x1xf32>
    %89 = arith.cmpf ogt, %16, %88 : vector<1x1xf32>
    %cst_35 = arith.constant 5.000000e-01 : f32
    %90 = vector.broadcast %cst_35 : f32 to vector<1x1xf32>
    %91 = arith.mulf %87, %90 : vector<1x1xf32>
    %92 = arith.select %89, %91, %87 : vector<1x1xi1>, vector<1x1xf32>
    %cst_36 = arith.constant 3.276800e+04 : f32
    %93 = vector.broadcast %cst_36 : f32 to vector<1x1xf32>
    %94 = arith.cmpf ogt, %16, %93 : vector<1x1xf32>
    %cst_37 = arith.constant 5.000000e-01 : f32
    %95 = vector.broadcast %cst_37 : f32 to vector<1x1xf32>
    %96 = arith.mulf %92, %95 : vector<1x1xf32>
    %97 = arith.select %94, %96, %92 : vector<1x1xi1>, vector<1x1xf32>
    %98 = vector.broadcast %97 : vector<1x1xf32> to vector<32x32xf32>
    %99 = arith.mulf %7, %98 : vector<32x32xf32>
    %cst_38 = arith.constant dense<0.000000e+00> : vector<32x32xf32>
    %100 = tpu.matmul %99, %11, %cst_38 {dimension_numbers = #tpu.dot_dimension_numbers<[1], [0], [0], [1], [0, 0, 1, 1], [], []>} : vector<32x32xf32>, vector<32x32xf32>, vector<32x32xf32> -> vector<32x32xf32>
    %cst_39 = arith.constant 0.0833333358 : f32
    %101 = vector.broadcast %cst_39 : f32 to vector<32x32xf32>
    %102 = arith.mulf %100, %101 : vector<32x32xf32>
    %103 = arith.addf %11, %102 : vector<32x32xf32>
    %cst_40 = arith.constant dense<0.000000e+00> : vector<32x32xf32>
    %104 = tpu.matmul %99, %103, %cst_40 {dimension_numbers = #tpu.dot_dimension_numbers<[1], [0], [0], [1], [0, 0, 1, 1], [], []>} : vector<32x32xf32>, vector<32x32xf32>, vector<32x32xf32> -> vector<32x32xf32>
    %cst_41 = arith.constant 0.0909090936 : f32
    %105 = vector.broadcast %cst_41 : f32 to vector<32x32xf32>
    %106 = arith.mulf %104, %105 : vector<32x32xf32>
    %107 = arith.addf %11, %106 : vector<32x32xf32>
    %cst_42 = arith.constant dense<0.000000e+00> : vector<32x32xf32>
    %108 = tpu.matmul %99, %107, %cst_42 {dimension_numbers = #tpu.dot_dimension_numbers<[1], [0], [0], [1], [0, 0, 1, 1], [], []>} : vector<32x32xf32>, vector<32x32xf32>, vector<32x32xf32> -> vector<32x32xf32>
    %cst_43 = arith.constant 1.000000e-01 : f32
    %109 = vector.broadcast %cst_43 : f32 to vector<32x32xf32>
    %110 = arith.mulf %108, %109 : vector<32x32xf32>
    %111 = arith.addf %11, %110 : vector<32x32xf32>
    %cst_44 = arith.constant dense<0.000000e+00> : vector<32x32xf32>
    %112 = tpu.matmul %99, %111, %cst_44 {dimension_numbers = #tpu.dot_dimension_numbers<[1], [0], [0], [1], [0, 0, 1, 1], [], []>} : vector<32x32xf32>, vector<32x32xf32>, vector<32x32xf32> -> vector<32x32xf32>
    %cst_45 = arith.constant 0.111111112 : f32
    %113 = vector.broadcast %cst_45 : f32 to vector<32x32xf32>
    %114 = arith.mulf %112, %113 : vector<32x32xf32>
    %115 = arith.addf %11, %114 : vector<32x32xf32>
    %cst_46 = arith.constant dense<0.000000e+00> : vector<32x32xf32>
    %116 = tpu.matmul %99, %115, %cst_46 {dimension_numbers = #tpu.dot_dimension_numbers<[1], [0], [0], [1], [0, 0, 1, 1], [], []>} : vector<32x32xf32>, vector<32x32xf32>, vector<32x32xf32> -> vector<32x32xf32>
    %cst_47 = arith.constant 1.250000e-01 : f32
    %117 = vector.broadcast %cst_47 : f32 to vector<32x32xf32>
    %118 = arith.mulf %116, %117 : vector<32x32xf32>
    %119 = arith.addf %11, %118 : vector<32x32xf32>
    %cst_48 = arith.constant dense<0.000000e+00> : vector<32x32xf32>
    %120 = tpu.matmul %99, %119, %cst_48 {dimension_numbers = #tpu.dot_dimension_numbers<[1], [0], [0], [1], [0, 0, 1, 1], [], []>} : vector<32x32xf32>, vector<32x32xf32>, vector<32x32xf32> -> vector<32x32xf32>
    %cst_49 = arith.constant 0.142857149 : f32
    %121 = vector.broadcast %cst_49 : f32 to vector<32x32xf32>
    %122 = arith.mulf %120, %121 : vector<32x32xf32>
    %123 = arith.addf %11, %122 : vector<32x32xf32>
    %cst_50 = arith.constant dense<0.000000e+00> : vector<32x32xf32>
    %124 = tpu.matmul %99, %123, %cst_50 {dimension_numbers = #tpu.dot_dimension_numbers<[1], [0], [0], [1], [0, 0, 1, 1], [], []>} : vector<32x32xf32>, vector<32x32xf32>, vector<32x32xf32> -> vector<32x32xf32>
    %cst_51 = arith.constant 0.166666672 : f32
    %125 = vector.broadcast %cst_51 : f32 to vector<32x32xf32>
    %126 = arith.mulf %124, %125 : vector<32x32xf32>
    %127 = arith.addf %11, %126 : vector<32x32xf32>
    %cst_52 = arith.constant dense<0.000000e+00> : vector<32x32xf32>
    %128 = tpu.matmul %99, %127, %cst_52 {dimension_numbers = #tpu.dot_dimension_numbers<[1], [0], [0], [1], [0, 0, 1, 1], [], []>} : vector<32x32xf32>, vector<32x32xf32>, vector<32x32xf32> -> vector<32x32xf32>
    %cst_53 = arith.constant 2.000000e-01 : f32
    %129 = vector.broadcast %cst_53 : f32 to vector<32x32xf32>
    %130 = arith.mulf %128, %129 : vector<32x32xf32>
    %131 = arith.addf %11, %130 : vector<32x32xf32>
    %cst_54 = arith.constant dense<0.000000e+00> : vector<32x32xf32>
    %132 = tpu.matmul %99, %131, %cst_54 {dimension_numbers = #tpu.dot_dimension_numbers<[1], [0], [0], [1], [0, 0, 1, 1], [], []>} : vector<32x32xf32>, vector<32x32xf32>, vector<32x32xf32> -> vector<32x32xf32>
    %cst_55 = arith.constant 2.500000e-01 : f32
    %133 = vector.broadcast %cst_55 : f32 to vector<32x32xf32>
    %134 = arith.mulf %132, %133 : vector<32x32xf32>
    %135 = arith.addf %11, %134 : vector<32x32xf32>
    %cst_56 = arith.constant dense<0.000000e+00> : vector<32x32xf32>
    %136 = tpu.matmul %99, %135, %cst_56 {dimension_numbers = #tpu.dot_dimension_numbers<[1], [0], [0], [1], [0, 0, 1, 1], [], []>} : vector<32x32xf32>, vector<32x32xf32>, vector<32x32xf32> -> vector<32x32xf32>
    %cst_57 = arith.constant 0.333333343 : f32
    %137 = vector.broadcast %cst_57 : f32 to vector<32x32xf32>
    %138 = arith.mulf %136, %137 : vector<32x32xf32>
    %139 = arith.addf %11, %138 : vector<32x32xf32>
    %cst_58 = arith.constant dense<0.000000e+00> : vector<32x32xf32>
    %140 = tpu.matmul %99, %139, %cst_58 {dimension_numbers = #tpu.dot_dimension_numbers<[1], [0], [0], [1], [0, 0, 1, 1], [], []>} : vector<32x32xf32>, vector<32x32xf32>, vector<32x32xf32> -> vector<32x32xf32>
    %cst_59 = arith.constant 5.000000e-01 : f32
    %141 = vector.broadcast %cst_59 : f32 to vector<32x32xf32>
    %142 = arith.mulf %140, %141 : vector<32x32xf32>
    %143 = arith.addf %11, %142 : vector<32x32xf32>
    %cst_60 = arith.constant dense<0.000000e+00> : vector<32x32xf32>
    %144 = tpu.matmul %99, %143, %cst_60 {dimension_numbers = #tpu.dot_dimension_numbers<[1], [0], [0], [1], [0, 0, 1, 1], [], []>} : vector<32x32xf32>, vector<32x32xf32>, vector<32x32xf32> -> vector<32x32xf32>
    %cst_61 = arith.constant 1.000000e+00 : f32
    %145 = vector.broadcast %cst_61 : f32 to vector<32x32xf32>
    %146 = arith.mulf %144, %145 : vector<32x32xf32>
    %147 = arith.addf %11, %146 : vector<32x32xf32>
    %cst_62 = arith.constant dense<0.000000e+00> : vector<32x32xf32>
    %148 = tpu.matmul %147, %147, %cst_62 {dimension_numbers = #tpu.dot_dimension_numbers<[1], [0], [0], [1], [0, 0, 1, 1], [], []>} : vector<32x32xf32>, vector<32x32xf32>, vector<32x32xf32> -> vector<32x32xf32>
    %149 = vector.shape_cast %19 : vector<1x1xi1> to vector<1x1xi1>
    %150 = vector.broadcast %149 : vector<1x1xi1> to vector<32x32xi1>
    %151 = arith.select %150, %148, %147 : vector<32x32xi1>, vector<32x32xf32>
    %cst_63 = arith.constant dense<0.000000e+00> : vector<32x32xf32>
    %152 = tpu.matmul %151, %151, %cst_63 {dimension_numbers = #tpu.dot_dimension_numbers<[1], [0], [0], [1], [0, 0, 1, 1], [], []>} : vector<32x32xf32>, vector<32x32xf32>, vector<32x32xf32> -> vector<32x32xf32>
    %153 = vector.shape_cast %24 : vector<1x1xi1> to vector<1x1xi1>
    %154 = vector.broadcast %153 : vector<1x1xi1> to vector<32x32xi1>
    %155 = arith.select %154, %152, %151 : vector<32x32xi1>, vector<32x32xf32>
    %cst_64 = arith.constant dense<0.000000e+00> : vector<32x32xf32>
    %156 = tpu.matmul %155, %155, %cst_64 {dimension_numbers = #tpu.dot_dimension_numbers<[1], [0], [0], [1], [0, 0, 1, 1], [], []>} : vector<32x32xf32>, vector<32x32xf32>, vector<32x32xf32> -> vector<32x32xf32>
    %157 = vector.shape_cast %29 : vector<1x1xi1> to vector<1x1xi1>
    %158 = vector.broadcast %157 : vector<1x1xi1> to vector<32x32xi1>
    %159 = arith.select %158, %156, %155 : vector<32x32xi1>, vector<32x32xf32>
    %cst_65 = arith.constant dense<0.000000e+00> : vector<32x32xf32>
    %160 = tpu.matmul %159, %159, %cst_65 {dimension_numbers = #tpu.dot_dimension_numbers<[1], [0], [0], [1], [0, 0, 1, 1], [], []>} : vector<32x32xf32>, vector<32x32xf32>, vector<32x32xf32> -> vector<32x32xf32>
    %161 = vector.shape_cast %34 : vector<1x1xi1> to vector<1x1xi1>
    %162 = vector.broadcast %161 : vector<1x1xi1> to vector<32x32xi1>
    %163 = arith.select %162, %160, %159 : vector<32x32xi1>, vector<32x32xf32>
    %cst_66 = arith.constant dense<0.000000e+00> : vector<32x32xf32>
    %164 = tpu.matmul %163, %163, %cst_66 {dimension_numbers = #tpu.dot_dimension_numbers<[1], [0], [0], [1], [0, 0, 1, 1], [], []>} : vector<32x32xf32>, vector<32x32xf32>, vector<32x32xf32> -> vector<32x32xf32>
    %165 = vector.shape_cast %39 : vector<1x1xi1> to vector<1x1xi1>
    %166 = vector.broadcast %165 : vector<1x1xi1> to vector<32x32xi1>
    %167 = arith.select %166, %164, %163 : vector<32x32xi1>, vector<32x32xf32>
    %cst_67 = arith.constant dense<0.000000e+00> : vector<32x32xf32>
    %168 = tpu.matmul %167, %167, %cst_67 {dimension_numbers = #tpu.dot_dimension_numbers<[1], [0], [0], [1], [0, 0, 1, 1], [], []>} : vector<32x32xf32>, vector<32x32xf32>, vector<32x32xf32> -> vector<32x32xf32>
    %169 = vector.shape_cast %44 : vector<1x1xi1> to vector<1x1xi1>
    %170 = vector.broadcast %169 : vector<1x1xi1> to vector<32x32xi1>
    %171 = arith.select %170, %168, %167 : vector<32x32xi1>, vector<32x32xf32>
    %cst_68 = arith.constant dense<0.000000e+00> : vector<32x32xf32>
    %172 = tpu.matmul %171, %171, %cst_68 {dimension_numbers = #tpu.dot_dimension_numbers<[1], [0], [0], [1], [0, 0, 1, 1], [], []>} : vector<32x32xf32>, vector<32x32xf32>, vector<32x32xf32> -> vector<32x32xf32>
    %173 = vector.shape_cast %49 : vector<1x1xi1> to vector<1x1xi1>
    %174 = vector.broadcast %173 : vector<1x1xi1> to vector<32x32xi1>
    %175 = arith.select %174, %172, %171 : vector<32x32xi1>, vector<32x32xf32>
    %cst_69 = arith.constant dense<0.000000e+00> : vector<32x32xf32>
    %176 = tpu.matmul %175, %175, %cst_69 {dimension_numbers = #tpu.dot_dimension_numbers<[1], [0], [0], [1], [0, 0, 1, 1], [], []>} : vector<32x32xf32>, vector<32x32xf32>, vector<32x32xf32> -> vector<32x32xf32>
    %177 = vector.shape_cast %54 : vector<1x1xi1> to vector<1x1xi1>
    %178 = vector.broadcast %177 : vector<1x1xi1> to vector<32x32xi1>
    %179 = arith.select %178, %176, %175 : vector<32x32xi1>, vector<32x32xf32>
    %cst_70 = arith.constant dense<0.000000e+00> : vector<32x32xf32>
    %180 = tpu.matmul %179, %179, %cst_70 {dimension_numbers = #tpu.dot_dimension_numbers<[1], [0], [0], [1], [0, 0, 1, 1], [], []>} : vector<32x32xf32>, vector<32x32xf32>, vector<32x32xf32> -> vector<32x32xf32>
    %181 = vector.shape_cast %59 : vector<1x1xi1> to vector<1x1xi1>
    %182 = vector.broadcast %181 : vector<1x1xi1> to vector<32x32xi1>
    %183 = arith.select %182, %180, %179 : vector<32x32xi1>, vector<32x32xf32>
    %cst_71 = arith.constant dense<0.000000e+00> : vector<32x32xf32>
    %184 = tpu.matmul %183, %183, %cst_71 {dimension_numbers = #tpu.dot_dimension_numbers<[1], [0], [0], [1], [0, 0, 1, 1], [], []>} : vector<32x32xf32>, vector<32x32xf32>, vector<32x32xf32> -> vector<32x32xf32>
    %185 = vector.shape_cast %64 : vector<1x1xi1> to vector<1x1xi1>
    %186 = vector.broadcast %185 : vector<1x1xi1> to vector<32x32xi1>
    %187 = arith.select %186, %184, %183 : vector<32x32xi1>, vector<32x32xf32>
    %cst_72 = arith.constant dense<0.000000e+00> : vector<32x32xf32>
    %188 = tpu.matmul %187, %187, %cst_72 {dimension_numbers = #tpu.dot_dimension_numbers<[1], [0], [0], [1], [0, 0, 1, 1], [], []>} : vector<32x32xf32>, vector<32x32xf32>, vector<32x32xf32> -> vector<32x32xf32>
    %189 = vector.shape_cast %69 : vector<1x1xi1> to vector<1x1xi1>
    %190 = vector.broadcast %189 : vector<1x1xi1> to vector<32x32xi1>
    %191 = arith.select %190, %188, %187 : vector<32x32xi1>, vector<32x32xf32>
    %cst_73 = arith.constant dense<0.000000e+00> : vector<32x32xf32>
    %192 = tpu.matmul %191, %191, %cst_73 {dimension_numbers = #tpu.dot_dimension_numbers<[1], [0], [0], [1], [0, 0, 1, 1], [], []>} : vector<32x32xf32>, vector<32x32xf32>, vector<32x32xf32> -> vector<32x32xf32>
    %193 = vector.shape_cast %74 : vector<1x1xi1> to vector<1x1xi1>
    %194 = vector.broadcast %193 : vector<1x1xi1> to vector<32x32xi1>
    %195 = arith.select %194, %192, %191 : vector<32x32xi1>, vector<32x32xf32>
    %cst_74 = arith.constant dense<0.000000e+00> : vector<32x32xf32>
    %196 = tpu.matmul %195, %195, %cst_74 {dimension_numbers = #tpu.dot_dimension_numbers<[1], [0], [0], [1], [0, 0, 1, 1], [], []>} : vector<32x32xf32>, vector<32x32xf32>, vector<32x32xf32> -> vector<32x32xf32>
    %197 = vector.shape_cast %79 : vector<1x1xi1> to vector<1x1xi1>
    %198 = vector.broadcast %197 : vector<1x1xi1> to vector<32x32xi1>
    %199 = arith.select %198, %196, %195 : vector<32x32xi1>, vector<32x32xf32>
    %cst_75 = arith.constant dense<0.000000e+00> : vector<32x32xf32>
    %200 = tpu.matmul %199, %199, %cst_75 {dimension_numbers = #tpu.dot_dimension_numbers<[1], [0], [0], [1], [0, 0, 1, 1], [], []>} : vector<32x32xf32>, vector<32x32xf32>, vector<32x32xf32> -> vector<32x32xf32>
    %201 = vector.shape_cast %84 : vector<1x1xi1> to vector<1x1xi1>
    %202 = vector.broadcast %201 : vector<1x1xi1> to vector<32x32xi1>
    %203 = arith.select %202, %200, %199 : vector<32x32xi1>, vector<32x32xf32>
    %cst_76 = arith.constant dense<0.000000e+00> : vector<32x32xf32>
    %204 = tpu.matmul %203, %203, %cst_76 {dimension_numbers = #tpu.dot_dimension_numbers<[1], [0], [0], [1], [0, 0, 1, 1], [], []>} : vector<32x32xf32>, vector<32x32xf32>, vector<32x32xf32> -> vector<32x32xf32>
    %205 = vector.shape_cast %89 : vector<1x1xi1> to vector<1x1xi1>
    %206 = vector.broadcast %205 : vector<1x1xi1> to vector<32x32xi1>
    %207 = arith.select %206, %204, %203 : vector<32x32xi1>, vector<32x32xf32>
    %cst_77 = arith.constant dense<0.000000e+00> : vector<32x32xf32>
    %208 = tpu.matmul %207, %207, %cst_77 {dimension_numbers = #tpu.dot_dimension_numbers<[1], [0], [0], [1], [0, 0, 1, 1], [], []>} : vector<32x32xf32>, vector<32x32xf32>, vector<32x32xf32> -> vector<32x32xf32>
    %209 = vector.shape_cast %94 : vector<1x1xi1> to vector<1x1xi1>
    %210 = vector.broadcast %209 : vector<1x1xi1> to vector<32x32xi1>
    %211 = arith.select %210, %208, %207 : vector<32x32xi1>, vector<32x32xf32>
    %c0_78 = arith.constant 0 : index
    %c0_79 = arith.constant 0 : index
    %212 = vector.load %arg1[%c0_78, %c0_79] : memref<32x32xf32, #tpu.memory_space<vmem>>, vector<32x32xf32>
    tpu.vector_store %arg1[%c0_78, %c0_79], %211 {strides = array<i32>} : memref<32x32xf32, #tpu.memory_space<vmem>>, vector<32x32xf32>,
    return
  }
}

</mosaic_0001>

<bundles_post_ra>
// kernel: tpu_custom_call.1
= control target key start
LH: loop header
LB: loop body
LE: loop exit
PB: predicated region body
PF: predicated region fallthrough
CT: control target
= control target key end

     0   :  { %6 = vsyncpa [#allocation3], 0  ;;  %s4493_s0 = inlined_call_operand.hbm [shape: f32[32,32], index: 0, kind: input, shape index: {}]   ;;  %s4494_s1 = inlined_call_operand.hbm [shape: f32[32,32], index: 1, kind: output, shape index: {}]  }
   0x1   :  { %7 = vsyncpa [#allocation4], 0  ;;  %s3967_s6 = smov [#allocation2]   ;;  %s3919_s10 = scalar_lea.hbm %s4493_s0, 512 }
   0x2   :  { %s13_s7 = sshll.u32 %s3967_s6, 4  ;;  %p3920_p0 = scmp.ne.s32.totalorder %s4493_s0, %s3919_s10  ;;  %s14_s7 = int_to_ptr.vmem [resolvable:$true] %s13_s7 }
   0x3   :  { %p3923_p1 = scmp.lt.u32.totalorder %s3919_s10, %s4493_s0 }
   0x5   :  { %p3925_p2 = pnand %p3923_p1, %p3920_p0 }
   0x7   :  { %3928 = shalt.err (!%p3925_p2)
}
   0x8   :  { %s3929_s15 = scalar_lea.vmem %s14_s7, 512  ;;  %p3934_p4 = scmp.lt.s32.totalorder %s14_s7, %s14_s7 }
   0x9   :  { %p3930_p3 = scmp.ne.s32.totalorder %s14_s7, %s3929_s15  ;;  %p3935_p5 = scmp.lt.s32.totalorder %s3929_s15, %s3929_s15 }
   0xb   :  { %p3936_p6 = por %p3935_p5, %p3934_p4 }
   0xd   :  { %p3937_p7 = pnand %p3936_p6, %p3930_p3 }
   0xf   :  { %3940 = shalt.err (!%p3937_p7)
}
  0x10   :  { %s3968_s16 = smov 128   ;;  %s3969_s17 = smov 8  }
  0x11   :  { %19 = dma.hbm_to_vmem [thread:$0]  %s4493_s0, 512, %s14_s7, [#allocation3], %s3968_s16, %s3968_s16, %s3969_s17  }
  0x12   :  { %3963 = dma.done.wait [#allocation3], 512  }
  0x13   :  { %3964 = vsyncadd [#allocation3], 4294966784  ;;  %v27_v0 = vlaneseq  ;;  %v23_v4 = vld [vmem:[#allocation2] sm:$0xff]  ;;  %v24_v5 = vld [vmem:[#allocation2 + $0x8] sm:$0xff]  ;;  %vm90_vm4 = vcmask 261120   ;;  %v3971_v44 = vmov 1.0  }
  0x14   :  { %v25_v9 = vld [vmem:[#allocation2 + $0x10] sm:$0xff]  ;;  %v26_v12 = vld [vmem:[#allocation2 + $0x18] sm:$0xff]  ;;  %v3970_v30 = vmov 1.0|1.0   ;;  %s3973_s0 = smov [#allocation5]  }
  0x15   :  { %v3999_v1 = vshrl.u32 %v27_v0, 7  ;;  %v4001_v2 = vand.u32 127, %v27_v0  ;;  %s2944_s20 = sshll.u32 %s3973_s0, 4  ;;  %s2945_s20 = int_to_ptr.vmem [resolvable:$true] %s2944_s20 }
  0x16   :  { %s3941_s21 = scalar_lea.vmem %s2945_s20, 512  ;;  %p3946_p9 = scmp.lt.s32.totalorder %s2945_s20, %s2945_s20 }
  0x17   :  { %v4004_v3 = vadd.s32 8, %v3999_v1  ;;  %vm34_vm0 = vcmp.ge.s32.totalorder %v4001_v2, %v3999_v1  ;;  %v4011_v6 = vadd.s32 16, %v3999_v1  ;;  %v4016_v10 = vadd.s32 24, %v3999_v1  ;;  %p3942_p8 = scmp.ne.s32.totalorder %s2945_s20, %s3941_s21  ;;  %p3947_p10 = scmp.lt.s32.totalorder %s3941_s21, %s3941_s21 }
  0x18   :  { %v38_v7 = vsel %vm34_vm0, %v23_v4, 0.0  ;;  %vm78_vm5 = vcmp.eq.s32.totalorder %v3999_v1, %v4001_v2 }
  0x19   :  { %vm35_vm1 = vcmp.ge.s32.totalorder %v4001_v2, %v4004_v3  ;;  %42 = vxpose.xlu0.b32.start [1/4] (short) (narrow) %v38_v7, 32  ;;  %vm36_vm2 = vcmp.ge.s32.totalorder %v4001_v2, %v4011_v6  ;;  %vm37_vm3 = vcmp.ge.s32.totalorder %v4001_v2, %v4016_v10  ;;  %vm79_vm6 = vcmp.eq.s32.totalorder %v4004_v3, %v4001_v2  ;;  %p3948_p11 = por %p3947_p10, %p3946_p9 }
  0x1a   :  { %v39_v8 = vsel %vm35_vm1, %v24_v5, 0.0  ;;  %v40_v11 = vsel %vm36_vm2, %v25_v9, 0.0  ;;  %v41_v13 = vsel %vm37_vm3, %v26_v12, 0.0  ;;  %vm3688_vm7 = vmpackc.low %vm79_vm6, %vm78_vm5  ;;  %vm80_vm8 = vcmp.eq.s32.totalorder %v4011_v6, %v4001_v2 }
  0x1b   :  { %vm81_vm9 = vcmp.eq.s32.totalorder %v4016_v10, %v4001_v2  ;;  %3689 = vmatprep.subr.msk.bf16.mxu0 %vm3688_vm7, %v3970_v30  ;;  %p3949_p12 = pnand %p3948_p11, %p3942_p8 }
  0x1c   :  { %vm3692_vm10 = vmpackc.low %vm81_vm9, %vm80_vm8  ;;  %3691 = vmatpush3.bf16.msk.msra.mxu0 %vm3688_vm7, %v3970_v30 }
  0x1d   :  { %43 = vxpose.xlu0.b32.cont [2/4] (short) (narrow) %v39_v8, 32  ;;  %3693 = vmatprep.subr.msk.bf16.mxu0 %vm3692_vm10, %v3970_v30 }
  0x20   :  { %3695 = vmatpush3.bf16.msk.msra.mxu0 %vm3692_vm10, %v3970_v30 }
  0x21   :  { %44 = vxpose.xlu0.b32.cont [3/4] (short) (narrow) %v40_v11, 32 }
  0x25   :  { %45 = vxpose.xlu0.b32.end [4/4] (short) (narrow) %v41_v13, 32 }
  0x99   :  { %v58_v14 = vpop.trf.xlu0 }
  0x9a   :  { %v4020_v15 = vsub.f32 %v38_v7, %v58_v14 }
  0x9c   :  { %v86_v16 = vand.u32 2147483647, %v4020_v15 }
  0x9d   :  { %v59_v17 = vpop.trf.xlu0 }
  0x9e   :  { %v4023_v18 = vsub.f32 %v39_v8, %v59_v17  ;;  %v91_v19 = vsel %vm90_vm4, %v86_v16, 0.0 }
  0x9f   :  { %92 = vadd.xlane.f32.xlu1 %v91_v19 }
  0xa0   :  { %v87_v20 = vand.u32 2147483647, %v4023_v18 }
  0xa1   :  { %v60_v21 = vpop.trf.xlu0 }
  0xa2   :  { %v4027_v22 = vsub.f32 %v40_v11, %v60_v21  ;;  %v94_v23 = vsel %vm90_vm4, %v87_v20, 0.0 }
  0xa3   :  { %95 = vadd.xlane.f32.xlu1 %v94_v23 }
  0xa4   :  { %v88_v24 = vand.u32 2147483647, %v4027_v22 }
  0xa5   :  { %v61_v25 = vpop.trf.xlu0 }
  0xa6   :  { %v4031_v26 = vsub.f32 %v41_v13, %v61_v25  ;;  %v97_v27 = vsel %vm90_vm4, %v88_v24, 0.0 }
  0xa7   :  { %98 = vadd.xlane.f32.xlu1 %v97_v27 }
  0xa8   :  { %v89_v28 = vand.u32 2147483647, %v4031_v26 }
  0xaa   :  { %v100_v29 = vsel %vm90_vm4, %v89_v28, 0.0 }
  0xab   :  { %101 = vadd.xlane.f32.xlu1 %v100_v29 }
 0x12c   :  { %v93_v31 = vpop.xlane.xlu1 %92 }
 0x130   :  { %v96_v32 = vpop.xlane.xlu1 %95 }
 0x131   :  { %v103_v35 = vmax.f32 %v93_v31, %v96_v32 }
 0x134   :  { %v99_v33 = vpop.xlane.xlu1 %98 }
 0x138   :  { %v102_v34 = vpop.xlane.xlu1 %101 }
 0x139   :  { %v104_v36 = vmax.f32 %v99_v33, %v102_v34 }
 0x13b   :  { %v105_v37 = vmax.f32 %v103_v35, %v104_v36 }
 0x13d   :  { %v106_v38 = vrot.slane %v105_v37, 4 }
 0x13f   :  { %v107_v39 = vmax.f32 %v105_v37, %v106_v38 }
 0x141   :  { %v108_v40 = vrot.slane %v107_v39, 2 }
 0x143   :  { %v109_v41 = vmax.f32 %v107_v39, %v108_v40 }
 0x145   :  { %v110_v42 = vrot.slane %v109_v41, 1 }
 0x147   :  { %v4056_v43 = vmax.f32 %v109_v41, %v110_v42 }
 0x149   :  { %vm112_vm11 = vcmp.gt.f32.partialorder %v4056_v43, 1.0  ;;  %vm114_vm12 = vcmp.gt.f32.partialorder %v4056_v43, 2.0  ;;  %vm117_vm13 = vcmp.gt.f32.partialorder %v4056_v43, 4.0  ;;  %vm120_vm14 = vcmp.gt.f32.partialorder %v4056_v43, 8.0 }
 0x14a   :  { %v113_v45 = vsel %vm112_vm11, 0.5, %v3971_v44  ;;  %vm123_vm15 = vcmp.gt.f32.partialorder %v4056_v43, 16.0  ;;  %vm126_vm0 = vcmp.gt.f32.partialorder %v4056_v43, 32.0  ;;  %vm129_vm1 = vcmp.gt.f32.partialorder %v4056_v43, 64.0 }
 0x14b   :  { %v115_v46 = vmul.f32 0.5, %v113_v45  ;;  %vm4495_vm2 = vcmp.gt.f32.partialorder %v4056_v43, 128.0  ;;  %vm4496_vm3 = vcmp.gt.f32.partialorder %v4056_v43, 256.0  ;;  %vm4497_vm7 = vcmp.gt.f32.partialorder %v4056_v43, 512.0 }
 0x14c   :  { %vm4498_vm10 = vcmp.gt.f32.partialorder %v4056_v43, 1024.0 }
 0x14d   :  { %v116_v47 = vsel %vm114_vm12, %v115_v46, %v113_v45 }
 0x14e   :  { %v118_v48 = vmul.f32 0.5, %v116_v47 }
 0x150   :  { %v119_v49 = vsel %vm117_vm13, %v118_v48, %v116_v47 }
 0x151   :  { %v121_v50 = vmul.f32 0.5, %v119_v49 }
 0x153   :  { %v122_v51 = vsel %vm120_vm14, %v121_v50, %v119_v49 }
 0x154   :  { %v124_v52 = vmul.f32 0.5, %v122_v51 }
 0x156   :  { %v125_v53 = vsel %vm123_vm15, %v124_v52, %v122_v51 }
 0x157   :  { %v127_v54 = vmul.f32 0.5, %v125_v53 }
 0x159   :  { %v128_v55 = vsel %vm126_vm0, %v127_v54, %v125_v53 }
 0x15a   :  { %v130_v56 = vmul.f32 0.5, %v128_v55 }
 0x15c   :  { %v131_v57 = vsel %vm129_vm1, %v130_v56, %v128_v55 }
 0x15d   :  { %v133_v58 = vmul.f32 0.5, %v131_v57 }
 0x15f   :  { %v134_v59 = vsel %vm4495_vm2, %v133_v58, %v131_v57  ;;  %vm4499_vm2 = vcmp.gt.f32.partialorder %v4056_v43, 2048.0 }
 0x160   :  { %v136_v60 = vmul.f32 0.5, %v134_v59 }
 0x162   :  { %v137_v61 = vsel %vm4496_vm3, %v136_v60, %v134_v59  ;;  %vm147_vm3 = vcmp.gt.f32.partialorder %v4056_v43, 4096.0 }
 0x163   :  { %v139_v62 = vmul.f32 0.5, %v137_v61 }
 0x165   :  { %v140_v63 = vsel %vm4497_vm7, %v139_v62, %v137_v61  ;;  %vm150_vm7 = vcmp.gt.f32.partialorder %v4056_v43, 8192.0 }
 0x166   :  { %v142_v0 = vmul.f32 0.5, %v140_v63 }
 0x168   :  { %v143_v4 = vsel %vm4498_vm10, %v142_v0, %v140_v63  ;;  %vm153_vm10 = vcmp.gt.f32.partialorder %v4056_v43, 16384.0 }
 0x169   :  { %v145_v5 = vmul.f32 0.5, %v143_v4 }
 0x16b   :  { %v146_v7 = vsel %vm4499_vm2, %v145_v5, %v143_v4  ;;  %vm156_vm2 = vcmp.gt.f32.partialorder %v4056_v43, 32768.0 }
 0x16c   :  { %v148_v8 = vmul.f32 0.5, %v146_v7 }
 0x16e   :  { %v149_v9 = vsel %vm147_vm3, %v148_v8, %v146_v7 }
 0x16f   :  { %v151_v11 = vmul.f32 0.5, %v149_v9 }
 0x171   :  { %v152_v12 = vsel %vm150_vm7, %v151_v11, %v149_v9 }
 0x172   :  { %v154_v13 = vmul.f32 0.5, %v152_v12 }
 0x174   :  { %v155_v14 = vsel %vm153_vm10, %v154_v13, %v152_v12 }
 0x175   :  { %v157_v16 = vmul.f32 0.5, %v155_v14 }
 0x177   :  { %v158_v17 = vsel %vm156_vm2, %v157_v16, %v155_v14 }
 0x178   :  { %v4107_v19 = vmul.f32 %v158_v17, %v4020_v15  ;;  %v4110_v20 = vmul.f32 %v158_v17, %v4023_v18  ;;  %v4117_v21 = vmul.f32 %v158_v17, %v4027_v22  ;;  %v4124_v15 = vmul.f32 %v158_v17, %v4031_v26 }
 0x179   :  { %v3972_v18 = vmov 0.0  }
 0x17a   :  { %3304 = vmatprep.mubr.msk.f32.mxu0 %vm90_vm4, %v4107_v19  ;;  %3318 = vmatprep.mubr.msk.f32.mxu1 %vm90_vm4, %v4107_v19  ;;  %v4133_v22 = vsel %vm79_vm6, 1.0, %v3972_v18  ;;  %v4138_v24 = vsel %vm78_vm5, 1.0, %v3972_v18  ;;  %v4144_v29 = vsel %vm81_vm9, 1.0, %v3972_v18  ;;  %v4150_v31 = vsel %vm80_vm8, 1.0, %v3972_v18 }
 0x17b   :  { %3305 = vmatmul.mubr.msk.f32.vlgmr.msra.gmra.mrb[0].mxu0 %vm90_vm4, %v4110_v20  ;;  %vm4500_vm5 = vcmp.gt.f32.partialorder %v4056_v43, 128.0 }
 0x17c   :  { %3307 = vmatprep.mubr.msk.f32.mxu0 %vm90_vm4, %v4117_v21  ;;  %vm4501_vm6 = vmmov %vm4500_vm5 }
 0x17d   :  { %vm4502_vm8 = vmmov %vm4500_vm5 }
 0x17e   :  { %vm4503_vm9 = vmmov %vm4500_vm5 }
 0x17f   :  { %3308 = vmatmul.mubr.msk.f32.gmra.mrb[2].mxu0 %vm90_vm4, %v4124_v15 }
 0x180   :  { %3332 = vmatprep.mubr.msk.f32.mxu0 %vm90_vm4, %v4107_v19 }
 0x24e   :  { %v3306_v23 = vpop.f32.mrb[0].mxu0 }
 0x24f   :  { %v261_v25 = vmul.f32 0.083333336, %v3306_v23  ;;  %v241_v26 = vpop.f32.mrb[1].mxu0 }
 0x250   :  { %v260_v27 = vmul.f32 0.083333336, %v241_v26 }
 0x251   :  { %v265_v28 = vadd.f32 %v261_v25, %v4133_v22 }
 0x252   :  { %v264_v3 = vadd.f32 %v260_v27, %v4138_v24  ;;  %v3309_v30 = vpop.f32.mrb[2].mxu0 }
 0x253   :  { %v263_v1 = vmul.f32 0.083333336, %v3309_v30  ;;  %v251_v32 = vpop.f32.mrb[3].mxu0 }
 0x254   :  { %v262_v33 = vmul.f32 0.083333336, %v251_v32  ;;  %v3696_v34 = vpack.c.bf16 %v265_v28, %v264_v3 }
 0x255   :  { %v267_v35 = vadd.f32 %v263_v1, %v4144_v29 }
 0x256   :  { %v266_v36 = vadd.f32 %v262_v33, %v4150_v31  ;;  %3697 = vmatprep.subr.bf16.mxu1 %v3696_v34 }
 0x257   :  { %3699 = vmatpush3.bf16.msra.mxu1 %v3696_v34 }
 0x258   :  { %v3700_v10 = vpack.c.bf16 %v267_v35, %v266_v36 }
 0x25a   :  { %3701 = vmatprep.subr.bf16.mxu1 %v3700_v10 }
 0x25b   :  { %3703 = vmatpush3.bf16.msra.mxu1 %v3700_v10 }
 0x25e   :  { %3319 = vmatmul.mubr.msk.f32.vlgmr.msra.gmra.mrb[0].mxu1 %vm90_vm4, %v4110_v20 }
 0x25f   :  { %3321 = vmatprep.mubr.msk.f32.mxu1 %vm90_vm4, %v4117_v21 }
 0x262   :  { %3322 = vmatmul.mubr.msk.f32.gmra.mrb[2].mxu1 %vm90_vm4, %v4124_v15 }
 0x263   :  { %3346 = vmatprep.mubr.msk.f32.mxu1 %vm90_vm4, %v4107_v19 }
 0x331   :  { %v3320_v2 = vpop.f32.mrb[0].mxu1 }
 0x332   :  { %v354_v6 = vmul.f32 0.09090909, %v3320_v2  ;;  %v334_v37 = vpop.f32.mrb[1].mxu1 }
 0x333   :  { %v353_v38 = vmul.f32 0.09090909, %v334_v37 }
 0x334   :  { %v358_v39 = vadd.f32 %v354_v6, %v4133_v22 }
 0x335   :  { %v357_v40 = vadd.f32 %v353_v38, %v4138_v24  ;;  %v3323_v41 = vpop.f32.mrb[2].mxu1 }
 0x336   :  { %v356_v42 = vmul.f32 0.09090909, %v3323_v41  ;;  %v344_v44 = vpop.f32.mrb[3].mxu1 }
 0x337   :  { %v355_v45 = vmul.f32 0.09090909, %v344_v44  ;;  %v3704_v46 = vpack.c.bf16 %v358_v39, %v357_v40 }
 0x338   :  { %v360_v47 = vadd.f32 %v356_v42, %v4144_v29 }
 0x339   :  { %v359_v48 = vadd.f32 %v355_v45, %v4150_v31  ;;  %3705 = vmatprep.subr.bf16.mxu0 %v3704_v46 }
 0x33a   :  { %3707 = vmatpush3.bf16.msra.mxu0 %v3704_v46 }
 0x33b   :  { %v3708_v49 = vpack.c.bf16 %v360_v47, %v359_v48 }
 0x33d   :  { %3709 = vmatprep.subr.bf16.mxu0 %v3708_v49 }
 0x33e   :  { %3711 = vmatpush3.bf16.msra.mxu0 %v3708_v49 }
 0x341   :  { %3333 = vmatmul.mubr.msk.f32.vlgmr.msra.gmra.mrb[4].mxu0 %vm90_vm4, %v4110_v20 }
 0x342   :  { %3335 = vmatprep.mubr.msk.f32.mxu0 %vm90_vm4, %v4117_v21 }
 0x345   :  { %3336 = vmatmul.mubr.msk.f32.gmra.mrb[6].mxu0 %vm90_vm4, %v4124_v15 }
 0x346   :  { %3360 = vmatprep.mubr.msk.f32.mxu0 %vm90_vm4, %v4107_v19 }
 0x414   :  { %v3334_v50 = vpop.f32.mrb[4].mxu0 }
 0x415   :  { %v447_v51 = vmul.f32 0.1, %v3334_v50  ;;  %v427_v52 = vpop.f32.mrb[5].mxu0 }
 0x416   :  { %v446_v53 = vmul.f32 0.1, %v427_v52 }
 0x417   :  { %v451_v54 = vadd.f32 %v447_v51, %v4133_v22 }
 0x418   :  { %v450_v55 = vadd.f32 %v446_v53, %v4138_v24  ;;  %v3337_v56 = vpop.f32.mrb[6].mxu0 }
 0x419   :  { %v449_v57 = vmul.f32 0.1, %v3337_v56  ;;  %v437_v58 = vpop.f32.mrb[7].mxu0 }
 0x41a   :  { %v448_v59 = vmul.f32 0.1, %v437_v58  ;;  %v3712_v60 = vpack.c.bf16 %v451_v54, %v450_v55 }
 0x41b   :  { %v453_v61 = vadd.f32 %v449_v57, %v4144_v29 }
 0x41c   :  { %v452_v62 = vadd.f32 %v448_v59, %v4150_v31  ;;  %3713 = vmatprep.subr.bf16.mxu1 %v3712_v60 }
 0x41d   :  { %3715 = vmatpush3.bf16.msra.mxu1 %v3712_v60 }
 0x41e   :  { %v3716_v63 = vpack.c.bf16 %v453_v61, %v452_v62 }
 0x420   :  { %3717 = vmatprep.subr.bf16.mxu1 %v3716_v63 }
 0x421   :  { %3719 = vmatpush3.bf16.msra.mxu1 %v3716_v63 }
 0x424   :  { %3347 = vmatmul.mubr.msk.f32.vlgmr.msra.gmra.mrb[4].mxu1 %vm90_vm4, %v4110_v20 }
 0x425   :  { %3349 = vmatprep.mubr.msk.f32.mxu1 %vm90_vm4, %v4117_v21 }
 0x428   :  { %3350 = vmatmul.mubr.msk.f32.gmra.mrb[6].mxu1 %vm90_vm4, %v4124_v15 }
 0x429   :  { %3374 = vmatprep.mubr.msk.f32.mxu1 %vm90_vm4, %v4107_v19 }
 0x4f7   :  { %v3348_v0 = vpop.f32.mrb[4].mxu1 }
 0x4f8   :  { %v540_v4 = vmul.f32 0.11111111, %v3348_v0  ;;  %v520_v5 = vpop.f32.mrb[5].mxu1 }
 0x4f9   :  { %v539_v7 = vmul.f32 0.11111111, %v520_v5 }
 0x4fa   :  { %v544_v8 = vadd.f32 %v540_v4, %v4133_v22 }
 0x4fb   :  { %v543_v9 = vadd.f32 %v539_v7, %v4138_v24  ;;  %v3351_v11 = vpop.f32.mrb[6].mxu1 }
 0x4fc   :  { %v542_v12 = vmul.f32 0.11111111, %v3351_v11  ;;  %v530_v13 = vpop.f32.mrb[7].mxu1 }
 0x4fd   :  { %v541_v14 = vmul.f32 0.11111111, %v530_v13  ;;  %v3720_v16 = vpack.c.bf16 %v544_v8, %v543_v9 }
 0x4fe   :  { %v546_v17 = vadd.f32 %v542_v12, %v4144_v29 }
 0x4ff   :  { %v545_v18 = vadd.f32 %v541_v14, %v4150_v31  ;;  %3721 = vmatprep.subr.bf16.mxu0 %v3720_v16 }
 0x500   :  { %3723 = vmatpush3.bf16.msra.mxu0 %v3720_v16 }
 0x501   :  { %v3724_v23 = vpack.c.bf16 %v546_v17, %v545_v18 }
 0x503   :  { %3725 = vmatprep.subr.bf16.mxu0 %v3724_v23 }
 0x504   :  { %3727 = vmatpush3.bf16.msra.mxu0 %v3724_v23 }
 0x507   :  { %3361 = vmatmul.mubr.msk.f32.vlgmr.msra.gmra.mrb[8].mxu0 %vm90_vm4, %v4110_v20 }
 0x508   :  { %3363 = vmatprep.mubr.msk.f32.mxu0 %vm90_vm4, %v4117_v21 }
 0x50b   :  { %3364 = vmatmul.mubr.msk.f32.gmra.mrb[10].mxu0 %vm90_vm4, %v4124_v15 }
 0x50c   :  { %3388 = vmatprep.mubr.msk.f32.mxu0 %vm90_vm4, %v4107_v19 }
 0x5da   :  { %v3362_v25 = vpop.f32.mrb[8].mxu0 }
 0x5db   :  { %v633_v26 = vmul.f32 0.125, %v3362_v25  ;;  %v613_v27 = vpop.f32.mrb[9].mxu0 }
 0x5dc   :  { %v632_v28 = vmul.f32 0.125, %v613_v27 }
 0x5dd   :  { %v637_v3 = vadd.f32 %v633_v26, %v4133_v22 }
 0x5de   :  { %v636_v30 = vadd.f32 %v632_v28, %v4138_v24  ;;  %v3365_v1 = vpop.f32.mrb[10].mxu0 }
 0x5df   :  { %v635_v32 = vmul.f32 0.125, %v3365_v1  ;;  %v623_v33 = vpop.f32.mrb[11].mxu0 }
 0x5e0   :  { %v634_v34 = vmul.f32 0.125, %v623_v33  ;;  %v3728_v35 = vpack.c.bf16 %v637_v3, %v636_v30 }
 0x5e1   :  { %v639_v36 = vadd.f32 %v635_v32, %v4144_v29 }
 0x5e2   :  { %v638_v10 = vadd.f32 %v634_v34, %v4150_v31  ;;  %3729 = vmatprep.subr.bf16.mxu1 %v3728_v35 }
 0x5e3   :  { %3731 = vmatpush3.bf16.msra.mxu1 %v3728_v35 }
 0x5e4   :  { %v3732_v2 = vpack.c.bf16 %v639_v36, %v638_v10 }
 0x5e6   :  { %3733 = vmatprep.subr.bf16.mxu1 %v3732_v2 }
 0x5e7   :  { %3735 = vmatpush3.bf16.msra.mxu1 %v3732_v2 }
 0x5ea   :  { %3375 = vmatmul.mubr.msk.f32.vlgmr.msra.gmra.mrb[8].mxu1 %vm90_vm4, %v4110_v20 }
 0x5eb   :  { %3377 = vmatprep.mubr.msk.f32.mxu1 %vm90_vm4, %v4117_v21 }
 0x5ee   :  { %3378 = vmatmul.mubr.msk.f32.gmra.mrb[10].mxu1 %vm90_vm4, %v4124_v15 }
 0x5ef   :  { %3402 = vmatprep.mubr.msk.f32.mxu1 %vm90_vm4, %v4107_v19 }
 0x6bd   :  { %v3376_v6 = vpop.f32.mrb[8].mxu1 }
 0x6be   :  { %v726_v37 = vmul.f32 0.14285715, %v3376_v6  ;;  %v706_v38 = vpop.f32.mrb[9].mxu1 }
 0x6bf   :  { %v725_v39 = vmul.f32 0.14285715, %v706_v38 }
 0x6c0   :  { %v730_v40 = vadd.f32 %v726_v37, %v4133_v22 }
 0x6c1   :  { %v729_v41 = vadd.f32 %v725_v39, %v4138_v24  ;;  %v3379_v42 = vpop.f32.mrb[10].mxu1 }
 0x6c2   :  { %v728_v44 = vmul.f32 0.14285715, %v3379_v42  ;;  %v716_v45 = vpop.f32.mrb[11].mxu1 }
 0x6c3   :  { %v727_v46 = vmul.f32 0.14285715, %v716_v45  ;;  %v3736_v47 = vpack.c.bf16 %v730_v40, %v729_v41 }
 0x6c4   :  { %v732_v48 = vadd.f32 %v728_v44, %v4144_v29 }
 0x6c5   :  { %v731_v49 = vadd.f32 %v727_v46, %v4150_v31  ;;  %3737 = vmatprep.subr.bf16.mxu0 %v3736_v47 }
 0x6c6   :  { %3739 = vmatpush3.bf16.msra.mxu0 %v3736_v47 }
 0x6c7   :  { %v3740_v50 = vpack.c.bf16 %v732_v48, %v731_v49 }
 0x6c9   :  { %3741 = vmatprep.subr.bf16.mxu0 %v3740_v50 }
 0x6ca   :  { %3743 = vmatpush3.bf16.msra.mxu0 %v3740_v50 }
 0x6cd   :  { %3389 = vmatmul.mubr.msk.f32.vlgmr.msra.gmra.mrb[12].mxu0 %vm90_vm4, %v4110_v20 }
 0x6ce   :  { %3391 = vmatprep.mubr.msk.f32.mxu0 %vm90_vm4, %v4117_v21 }
 0x6d1   :  { %3392 = vmatmul.mubr.msk.f32.gmra.mrb[14].mxu0 %vm90_vm4, %v4124_v15 }
 0x6d2   :  { %3416 = vmatprep.mubr.msk.f32.mxu0 %vm90_vm4, %v4107_v19 }
 0x7a0   :  { %v3390_v51 = vpop.f32.mrb[12].mxu0 }
 0x7a1   :  { %v819_v52 = vmul.f32 0.16666667, %v3390_v51  ;;  %v799_v53 = vpop.f32.mrb[13].mxu0 }
 0x7a2   :  { %v818_v54 = vmul.f32 0.16666667, %v799_v53 }
 0x7a3   :  { %v823_v55 = vadd.f32 %v819_v52, %v4133_v22 }
 0x7a4   :  { %v822_v56 = vadd.f32 %v818_v54, %v4138_v24  ;;  %v3393_v57 = vpop.f32.mrb[14].mxu0 }
 0x7a5   :  { %v821_v58 = vmul.f32 0.16666667, %v3393_v57  ;;  %v809_v59 = vpop.f32.mrb[15].mxu0 }
 0x7a6   :  { %v820_v60 = vmul.f32 0.16666667, %v809_v59  ;;  %v3744_v61 = vpack.c.bf16 %v823_v55, %v822_v56 }
 0x7a7   :  { %v825_v62 = vadd.f32 %v821_v58, %v4144_v29 }
 0x7a8   :  { %v824_v63 = vadd.f32 %v820_v60, %v4150_v31  ;;  %3745 = vmatprep.subr.bf16.mxu1 %v3744_v61 }
 0x7a9   :  { %3747 = vmatpush3.bf16.msra.mxu1 %v3744_v61 }
 0x7aa   :  { %v3748_v0 = vpack.c.bf16 %v825_v62, %v824_v63 }
 0x7ac   :  { %3749 = vmatprep.subr.bf16.mxu1 %v3748_v0 }
 0x7ad   :  { %3751 = vmatpush3.bf16.msra.mxu1 %v3748_v0 }
 0x7b0   :  { %3403 = vmatmul.mubr.msk.f32.vlgmr.msra.gmra.mrb[12].mxu1 %vm90_vm4, %v4110_v20 }
 0x7b1   :  { %3405 = vmatprep.mubr.msk.f32.mxu1 %vm90_vm4, %v4117_v21 }
 0x7b4   :  { %3406 = vmatmul.mubr.msk.f32.gmra.mrb[14].mxu1 %vm90_vm4, %v4124_v15 }
 0x7b5   :  { %3430 = vmatprep.mubr.msk.f32.mxu1 %vm90_vm4, %v4107_v19 }
 0x883   :  { %v3404_v4 = vpop.f32.mrb[12].mxu1 }
 0x884   :  { %v912_v5 = vmul.f32 0.2, %v3404_v4  ;;  %v892_v7 = vpop.f32.mrb[13].mxu1 }
 0x885   :  { %v911_v8 = vmul.f32 0.2, %v892_v7 }
 0x886   :  { %v916_v9 = vadd.f32 %v912_v5, %v4133_v22 }
 0x887   :  { %v915_v11 = vadd.f32 %v911_v8, %v4138_v24  ;;  %v3407_v12 = vpop.f32.mrb[14].mxu1 }
 0x888   :  { %v914_v13 = vmul.f32 0.2, %v3407_v12  ;;  %v902_v14 = vpop.f32.mrb[15].mxu1 }
 0x889   :  { %v913_v16 = vmul.f32 0.2, %v902_v14  ;;  %v3752_v17 = vpack.c.bf16 %v916_v9, %v915_v11 }
 0x88a   :  { %v918_v18 = vadd.f32 %v914_v13, %v4144_v29 }
 0x88b   :  { %v917_v23 = vadd.f32 %v913_v16, %v4150_v31  ;;  %3753 = vmatprep.subr.bf16.mxu0 %v3752_v17 }
 0x88c   :  { %3755 = vmatpush3.bf16.msra.mxu0 %v3752_v17 }
 0x88d   :  { %v3756_v25 = vpack.c.bf16 %v918_v18, %v917_v23 }
 0x88f   :  { %3757 = vmatprep.subr.bf16.mxu0 %v3756_v25 }
 0x890   :  { %3759 = vmatpush3.bf16.msra.mxu0 %v3756_v25 }
 0x893   :  { %3417 = vmatmul.mubr.msk.f32.vlgmr.msra.gmra.mrb[16].mxu0 %vm90_vm4, %v4110_v20 }
 0x894   :  { %3419 = vmatprep.mubr.msk.f32.mxu0 %vm90_vm4, %v4117_v21 }
 0x897   :  { %3420 = vmatmul.mubr.msk.f32.gmra.mrb[18].mxu0 %vm90_vm4, %v4124_v15 }
 0x898   :  { %3444 = vmatprep.mubr.msk.f32.mxu0 %vm90_vm4, %v4107_v19 }
 0x966   :  { %v3418_v26 = vpop.f32.mrb[16].mxu0 }
 0x967   :  { %v1005_v27 = vmul.f32 0.25, %v3418_v26  ;;  %v985_v28 = vpop.f32.mrb[17].mxu0 }
 0x968   :  { %v1004_v3 = vmul.f32 0.25, %v985_v28 }
 0x969   :  { %v1009_v30 = vadd.f32 %v1005_v27, %v4133_v22 }
 0x96a   :  { %v1008_v1 = vadd.f32 %v1004_v3, %v4138_v24  ;;  %v3421_v32 = vpop.f32.mrb[18].mxu0 }
 0x96b   :  { %v1007_v33 = vmul.f32 0.25, %v3421_v32  ;;  %v995_v34 = vpop.f32.mrb[19].mxu0 }
 0x96c   :  { %v1006_v35 = vmul.f32 0.25, %v995_v34  ;;  %v3760_v36 = vpack.c.bf16 %v1009_v30, %v1008_v1 }
 0x96d   :  { %v1011_v10 = vadd.f32 %v1007_v33, %v4144_v29 }
 0x96e   :  { %v1010_v2 = vadd.f32 %v1006_v35, %v4150_v31  ;;  %3761 = vmatprep.subr.bf16.mxu1 %v3760_v36 }
 0x96f   :  { %3763 = vmatpush3.bf16.msra.mxu1 %v3760_v36 }
 0x970   :  { %v3764_v6 = vpack.c.bf16 %v1011_v10, %v1010_v2 }
 0x972   :  { %3765 = vmatprep.subr.bf16.mxu1 %v3764_v6 }
 0x973   :  { %3767 = vmatpush3.bf16.msra.mxu1 %v3764_v6 }
 0x976   :  { %3431 = vmatmul.mubr.msk.f32.vlgmr.msra.gmra.mrb[16].mxu1 %vm90_vm4, %v4110_v20 }
 0x977   :  { %3433 = vmatprep.mubr.msk.f32.mxu1 %vm90_vm4, %v4117_v21 }
 0x97a   :  { %3434 = vmatmul.mubr.msk.f32.gmra.mrb[18].mxu1 %vm90_vm4, %v4124_v15 }
 0x97b   :  { %3458 = vmatprep.mubr.msk.f32.mxu1 %vm90_vm4, %v4107_v19 }
 0xa49   :  { %v3432_v37 = vpop.f32.mrb[16].mxu1 }
 0xa4a   :  { %v1098_v38 = vmul.f32 0.33333334, %v3432_v37  ;;  %v1078_v39 = vpop.f32.mrb[17].mxu1 }
 0xa4b   :  { %v1097_v40 = vmul.f32 0.33333334, %v1078_v39 }
 0xa4c   :  { %v1102_v41 = vadd.f32 %v1098_v38, %v4133_v22 }
 0xa4d   :  { %v1101_v42 = vadd.f32 %v1097_v40, %v4138_v24  ;;  %v3435_v44 = vpop.f32.mrb[18].mxu1 }
 0xa4e   :  { %v1100_v45 = vmul.f32 0.33333334, %v3435_v44  ;;  %v1088_v46 = vpop.f32.mrb[19].mxu1 }
 0xa4f   :  { %v1099_v47 = vmul.f32 0.33333334, %v1088_v46  ;;  %v3768_v48 = vpack.c.bf16 %v1102_v41, %v1101_v42 }
 0xa50   :  { %v1104_v49 = vadd.f32 %v1100_v45, %v4144_v29 }
 0xa51   :  { %v1103_v50 = vadd.f32 %v1099_v47, %v4150_v31  ;;  %3769 = vmatprep.subr.bf16.mxu0 %v3768_v48 }
 0xa52   :  { %3771 = vmatpush3.bf16.msra.mxu0 %v3768_v48 }
 0xa53   :  { %v3772_v19 = vpack.c.bf16 %v1104_v49, %v1103_v50 }
 0xa55   :  { %3773 = vmatprep.subr.bf16.mxu0 %v3772_v19 }
 0xa56   :  { %3775 = vmatpush3.bf16.msra.mxu0 %v3772_v19 }
 0xa59   :  { %3445 = vmatmul.mubr.msk.f32.vlgmr.msra.gmra.mrb[20].mxu0 %vm90_vm4, %v4110_v20 }
 0xa5a   :  { %3447 = vmatprep.mubr.msk.f32.mxu0 %vm90_vm4, %v4117_v21 }
 0xa5d   :  { %3448 = vmatmul.mubr.msk.f32.gmra.mrb[22].mxu0 %vm90_vm4, %v4124_v15 }
 0xb2c   :  { %v3446_v51 = vpop.f32.mrb[20].mxu0 }
 0xb2d   :  { %v1191_v52 = vmul.f32 0.5, %v3446_v51  ;;  %v1171_v53 = vpop.f32.mrb[21].mxu0 }
 0xb2e   :  { %v1190_v54 = vmul.f32 0.5, %v1171_v53 }
 0xb2f   :  { %v1195_v55 = vadd.f32 %v1191_v52, %v4133_v22 }
 0xb30   :  { %v1194_v56 = vadd.f32 %v1190_v54, %v4138_v24  ;;  %v3449_v57 = vpop.f32.mrb[22].mxu0 }
 0xb31   :  { %v1193_v58 = vmul.f32 0.5, %v3449_v57  ;;  %v1181_v59 = vpop.f32.mrb[23].mxu0 }
 0xb32   :  { %v1192_v60 = vmul.f32 0.5, %v1181_v59  ;;  %v3776_v61 = vpack.c.bf16 %v1195_v55, %v1194_v56 }
 0xb33   :  { %v1197_v62 = vadd.f32 %v1193_v58, %v4144_v29 }
 0xb34   :  { %v1196_v63 = vadd.f32 %v1192_v60, %v4150_v31  ;;  %3777 = vmatprep.subr.bf16.mxu1 %v3776_v61 }
 0xb35   :  { %3779 = vmatpush3.bf16.msra.mxu1 %v3776_v61 }
 0xb36   :  { %v3780_v0 = vpack.c.bf16 %v1197_v62, %v1196_v63 }
 0xb38   :  { %3781 = vmatprep.subr.bf16.mxu1 %v3780_v0 }
 0xb39   :  { %3783 = vmatpush3.bf16.msra.mxu1 %v3780_v0 }
 0xb3c   :  { %3459 = vmatmul.mubr.msk.f32.vlgmr.msra.gmra.mrb[20].mxu1 %vm90_vm4, %v4110_v20 }
 0xb3d   :  { %3461 = vmatprep.mubr.msk.f32.mxu1 %vm90_vm4, %v4117_v21 }
 0xb40   :  { %3462 = vmatmul.mubr.msk.f32.gmra.mrb[22].mxu1 %vm90_vm4, %v4124_v15 }
 0xc0f   :  { %v3460_v4 = vpop.f32.mrb[20].mxu1 }
 0xc10   :  { %v1284_v5 = vadd.f32 %v3460_v4, %v4133_v22  ;;  %v1264_v7 = vpop.f32.mrb[21].mxu1 }
 0xc11   :  { %v1283_v8 = vadd.f32 %v1264_v7, %v4138_v24 }
 0xc13   :  { %v3463_v9 = vpop.f32.mrb[22].mxu1  ;;  %3472 = vmatprep.mubr.msk.f32.mxu0 %vm90_vm4, %v1283_v8  ;;  %v3784_v11 = vpack.c.bf16 %v1284_v5, %v1283_v8 }
 0xc14   :  { %v1286_v12 = vadd.f32 %v3463_v9, %v4144_v29  ;;  %v1274_v13 = vpop.f32.mrb[23].mxu1 }
 0xc15   :  { %v1285_v20 = vadd.f32 %v1274_v13, %v4150_v31  ;;  %3785 = vmatprep.subr.bf16.mxu0 %v3784_v11 }
 0xc16   :  { %3787 = vmatpush3.bf16.msra.mxu0 %v3784_v11 }
 0xc17   :  { %v3788_v21 = vpack.c.bf16 %v1286_v12, %v1285_v20 }
 0xc19   :  { %3789 = vmatprep.subr.bf16.mxu0 %v3788_v21 }
 0xc1a   :  { %3791 = vmatpush3.bf16.msra.mxu0 %v3788_v21 }
 0xc1d   :  { %3473 = vmatmul.mubr.msk.f32.vlgmr.msra.gmra.mrb[24].mxu0 %vm90_vm4, %v1284_v5 }
 0xc1e   :  { %3475 = vmatprep.mubr.msk.f32.mxu0 %vm90_vm4, %v1285_v20 }
 0xc21   :  { %3476 = vmatmul.mubr.msk.f32.gmra.mrb[26].mxu0 %vm90_vm4, %v1286_v12 }
 0xcf0   :  { %v3474_v15 = vpop.f32.mrb[24].mxu0 }
 0xcf1   :  { %v1387_v22 = vsel %vm112_vm11, %v3474_v15, %v1284_v5  ;;  %v1365_v24 = vpop.f32.mrb[25].mxu0 }
 0xcf2   :  { %v1386_v29 = vsel %vm112_vm11, %v1365_v24, %v1283_v8 }
 0xcf3   :  { %3486 = vmatprep.mubr.msk.f32.mxu1 %vm90_vm4, %v1386_v29  ;;  %v3792_v31 = vpack.c.bf16 %v1387_v22, %v1386_v29 }
 0xcf4   :  { %v3477_v14 = vpop.f32.mrb[26].mxu0 }
 0xcf5   :  { %v1389_v16 = vsel %vm112_vm11, %v3477_v14, %v1286_v12  ;;  %v1375_v17 = vpop.f32.mrb[27].mxu0  ;;  %3793 = vmatprep.subr.bf16.mxu1 %v3792_v31 }
 0xcf6   :  { %v1388_v18 = vsel %vm112_vm11, %v1375_v17, %v1285_v20  ;;  %3795 = vmatpush3.bf16.msra.mxu1 %v3792_v31  ;;  %vm4504_vm11 = vcmp.gt.f32.partialorder %v4056_v43, 256.0 }
 0xcf7   :  { %v3796_v23 = vpack.c.bf16 %v1389_v16, %v1388_v18 }
 0xcf9   :  { %3797 = vmatprep.subr.bf16.mxu1 %v3796_v23 }
 0xcfa   :  { %3799 = vmatpush3.bf16.msra.mxu1 %v3796_v23 }
 0xcfd   :  { %3487 = vmatmul.mubr.msk.f32.vlgmr.msra.gmra.mrb[24].mxu1 %vm90_vm4, %v1387_v22 }
 0xcfe   :  { %3489 = vmatprep.mubr.msk.f32.mxu1 %vm90_vm4, %v1388_v18 }
 0xd01   :  { %3490 = vmatmul.mubr.msk.f32.gmra.mrb[26].mxu1 %vm90_vm4, %v1389_v16 }
 0xdd0   :  { %v3488_v25 = vpop.f32.mrb[24].mxu1 }
 0xdd1   :  { %v1490_v26 = vsel %vm114_vm12, %v3488_v25, %v1387_v22  ;;  %v1468_v27 = vpop.f32.mrb[25].mxu1 }
 0xdd2   :  { %v1489_v28 = vsel %vm114_vm12, %v1468_v27, %v1386_v29 }
 0xdd3   :  { %3500 = vmatprep.mubr.msk.f32.mxu0 %vm90_vm4, %v1489_v28  ;;  %v3800_v3 = vpack.c.bf16 %v1490_v26, %v1489_v28 }
 0xdd4   :  { %v3491_v30 = vpop.f32.mrb[26].mxu1 }
 0xdd5   :  { %v1492_v1 = vsel %vm114_vm12, %v3491_v30, %v1389_v16  ;;  %v1478_v32 = vpop.f32.mrb[27].mxu1  ;;  %3801 = vmatprep.subr.bf16.mxu0 %v3800_v3 }
 0xdd6   :  { %v1491_v33 = vsel %vm114_vm12, %v1478_v32, %v1388_v18  ;;  %3803 = vmatpush3.bf16.msra.mxu0 %v3800_v3  ;;  %vm4505_vm12 = vmmov %vm4504_vm11 }
 0xdd7   :  { %v3804_v34 = vpack.c.bf16 %v1492_v1, %v1491_v33 }
 0xdd9   :  { %3805 = vmatprep.subr.bf16.mxu0 %v3804_v34 }
 0xdda   :  { %3807 = vmatpush3.bf16.msra.mxu0 %v3804_v34 }
 0xddd   :  { %3501 = vmatmul.mubr.msk.f32.vlgmr.msra.gmra.mrb[28].mxu0 %vm90_vm4, %v1490_v26 }
 0xdde   :  { %3503 = vmatprep.mubr.msk.f32.mxu0 %vm90_vm4, %v1491_v33 }
 0xde1   :  { %3504 = vmatmul.mubr.msk.f32.gmra.mrb[30].mxu0 %vm90_vm4, %v1492_v1 }
 0xeb0   :  { %v3502_v35 = vpop.f32.mrb[28].mxu0 }
 0xeb1   :  { %v1593_v36 = vsel %vm117_vm13, %v3502_v35, %v1490_v26  ;;  %v1571_v10 = vpop.f32.mrb[29].mxu0 }
 0xeb2   :  { %v1592_v2 = vsel %vm117_vm13, %v1571_v10, %v1489_v28 }
 0xeb3   :  { %3514 = vmatprep.mubr.msk.f32.mxu1 %vm90_vm4, %v1592_v2  ;;  %v3808_v6 = vpack.c.bf16 %v1593_v36, %v1592_v2 }
 0xeb4   :  { %v3505_v37 = vpop.f32.mrb[30].mxu0 }
 0xeb5   :  { %v1595_v38 = vsel %vm117_vm13, %v3505_v37, %v1492_v1  ;;  %v1581_v39 = vpop.f32.mrb[31].mxu0  ;;  %3809 = vmatprep.subr.bf16.mxu1 %v3808_v6 }
 0xeb6   :  { %v1594_v40 = vsel %vm117_vm13, %v1581_v39, %v1491_v33  ;;  %3811 = vmatpush3.bf16.msra.mxu1 %v3808_v6  ;;  %vm4506_vm13 = vmmov %vm4504_vm11 }
 0xeb7   :  { %v3812_v41 = vpack.c.bf16 %v1595_v38, %v1594_v40 }
 0xeb9   :  { %3813 = vmatprep.subr.bf16.mxu1 %v3812_v41 }
 0xeba   :  { %3815 = vmatpush3.bf16.msra.mxu1 %v3812_v41 }
 0xebd   :  { %3515 = vmatmul.mubr.msk.f32.vlgmr.msra.gmra.mrb[28].mxu1 %vm90_vm4, %v1593_v36 }
 0xebe   :  { %3517 = vmatprep.mubr.msk.f32.mxu1 %vm90_vm4, %v1594_v40 }
 0xec1   :  { %3518 = vmatmul.mubr.msk.f32.gmra.mrb[30].mxu1 %vm90_vm4, %v1595_v38 }
 0xf90   :  { %v3516_v42 = vpop.f32.mrb[28].mxu1 }
 0xf91   :  { %v1696_v44 = vsel %vm120_vm14, %v3516_v42, %v1593_v36  ;;  %v1674_v45 = vpop.f32.mrb[29].mxu1 }
 0xf92   :  { %v1695_v46 = vsel %vm120_vm14, %v1674_v45, %v1592_v2 }
 0xf93   :  { %3528 = vmatprep.mubr.msk.f32.mxu0 %vm90_vm4, %v1695_v46  ;;  %v3816_v47 = vpack.c.bf16 %v1696_v44, %v1695_v46 }
 0xf94   :  { %v3519_v48 = vpop.f32.mrb[30].mxu1 }
 0xf95   :  { %v1698_v49 = vsel %vm120_vm14, %v3519_v48, %v1595_v38  ;;  %v1684_v50 = vpop.f32.mrb[31].mxu1  ;;  %3817 = vmatprep.subr.bf16.mxu0 %v3816_v47 }
 0xf96   :  { %v1697_v19 = vsel %vm120_vm14, %v1684_v50, %v1594_v40  ;;  %3819 = vmatpush3.bf16.msra.mxu0 %v3816_v47  ;;  %vm4507_vm14 = vmmov %vm4504_vm11 }
 0xf97   :  { %v3820_v51 = vpack.c.bf16 %v1698_v49, %v1697_v19 }
 0xf99   :  { %3821 = vmatprep.subr.bf16.mxu0 %v3820_v51 }
 0xf9a   :  { %3823 = vmatpush3.bf16.msra.mxu0 %v3820_v51 }
 0xf9d   :  { %3529 = vmatmul.mubr.msk.f32.vlgmr.msra.gmra.mrb[32].mxu0 %vm90_vm4, %v1696_v44 }
 0xf9e   :  { %3531 = vmatprep.mubr.msk.f32.mxu0 %vm90_vm4, %v1697_v19 }
 0xfa1   :  { %3532 = vmatmul.mubr.msk.f32.gmra.mrb[34].mxu0 %vm90_vm4, %v1698_v49 }
0x1070   :  { %v3530_v52 = vpop.f32.mrb[32].mxu0 }
0x1071   :  { %v1799_v53 = vsel %vm123_vm15, %v3530_v52, %v1696_v44  ;;  %v1777_v54 = vpop.f32.mrb[33].mxu0 }
0x1072   :  { %v1798_v55 = vsel %vm123_vm15, %v1777_v54, %v1695_v46 }
0x1073   :  { %3542 = vmatprep.mubr.msk.f32.mxu1 %vm90_vm4, %v1798_v55  ;;  %v3824_v56 = vpack.c.bf16 %v1799_v53, %v1798_v55 }
0x1074   :  { %v3533_v57 = vpop.f32.mrb[34].mxu0 }
0x1075   :  { %v1801_v58 = vsel %vm123_vm15, %v3533_v57, %v1698_v49  ;;  %v1787_v59 = vpop.f32.mrb[35].mxu0  ;;  %3825 = vmatprep.subr.bf16.mxu1 %v3824_v56 }
0x1076   :  { %v1800_v60 = vsel %vm123_vm15, %v1787_v59, %v1697_v19  ;;  %3827 = vmatpush3.bf16.msra.mxu1 %v3824_v56  ;;  %vm4508_vm15 = vcmp.gt.f32.partialorder %v4056_v43, 512.0 }
0x1077   :  { %v3828_v61 = vpack.c.bf16 %v1801_v58, %v1800_v60 }
0x1079   :  { %3829 = vmatprep.subr.bf16.mxu1 %v3828_v61 }
0x107a   :  { %3831 = vmatpush3.bf16.msra.mxu1 %v3828_v61 }
0x107d   :  { %3543 = vmatmul.mubr.msk.f32.vlgmr.msra.gmra.mrb[32].mxu1 %vm90_vm4, %v1799_v53 }
0x107e   :  { %3545 = vmatprep.mubr.msk.f32.mxu1 %vm90_vm4, %v1800_v60 }
0x1081   :  { %3546 = vmatmul.mubr.msk.f32.gmra.mrb[34].mxu1 %vm90_vm4, %v1801_v58 }
0x1150   :  { %v3544_v62 = vpop.f32.mrb[32].mxu1 }
0x1151   :  { %v1902_v63 = vsel %vm126_vm0, %v3544_v62, %v1799_v53  ;;  %v1880_v0 = vpop.f32.mrb[33].mxu1 }
0x1152   :  { %v1901_v4 = vsel %vm126_vm0, %v1880_v0, %v1798_v55 }
0x1153   :  { %3556 = vmatprep.mubr.msk.f32.mxu0 %vm90_vm4, %v1901_v4  ;;  %v3832_v5 = vpack.c.bf16 %v1902_v63, %v1901_v4 }
0x1154   :  { %v3547_v7 = vpop.f32.mrb[34].mxu1 }
0x1155   :  { %v1904_v8 = vsel %vm126_vm0, %v3547_v7, %v1801_v58  ;;  %v1890_v9 = vpop.f32.mrb[35].mxu1  ;;  %3833 = vmatprep.subr.bf16.mxu0 %v3832_v5 }
0x1156   :  { %v1903_v11 = vsel %vm126_vm0, %v1890_v9, %v1800_v60  ;;  %3835 = vmatpush3.bf16.msra.mxu0 %v3832_v5  ;;  %vm4509_vm0 = vmmov %vm4508_vm15 }
0x1157   :  { %v3836_v12 = vpack.c.bf16 %v1904_v8, %v1903_v11 }
0x1159   :  { %3837 = vmatprep.subr.bf16.mxu0 %v3836_v12 }
0x115a   :  { %3839 = vmatpush3.bf16.msra.mxu0 %v3836_v12 }
0x115d   :  { %3557 = vmatmul.mubr.msk.f32.vlgmr.msra.gmra.mrb[36].mxu0 %vm90_vm4, %v1902_v63 }
0x115e   :  { %3559 = vmatprep.mubr.msk.f32.mxu0 %vm90_vm4, %v1903_v11 }
0x1161   :  { %3560 = vmatmul.mubr.msk.f32.gmra.mrb[38].mxu0 %vm90_vm4, %v1904_v8 }
0x1230   :  { %v3558_v13 = vpop.f32.mrb[36].mxu0 }
0x1231   :  { %v2005_v20 = vsel %vm129_vm1, %v3558_v13, %v1902_v63  ;;  %v1983_v21 = vpop.f32.mrb[37].mxu0 }
0x1232   :  { %v2004_v15 = vsel %vm129_vm1, %v1983_v21, %v1901_v4 }
0x1233   :  { %3570 = vmatprep.mubr.msk.f32.mxu1 %vm90_vm4, %v2004_v15  ;;  %v3840_v22 = vpack.c.bf16 %v2005_v20, %v2004_v15 }
0x1234   :  { %v3561_v24 = vpop.f32.mrb[38].mxu0 }
0x1235   :  { %v2007_v29 = vsel %vm129_vm1, %v3561_v24, %v1904_v8  ;;  %v1993_v31 = vpop.f32.mrb[39].mxu0  ;;  %3841 = vmatprep.subr.bf16.mxu1 %v3840_v22 }
0x1236   :  { %v2006_v14 = vsel %vm129_vm1, %v1993_v31, %v1903_v11  ;;  %3843 = vmatpush3.bf16.msra.mxu1 %v3840_v22  ;;  %vm4510_vm1 = vmmov %vm4509_vm0 }
0x1237   :  { %v3844_v16 = vpack.c.bf16 %v2007_v29, %v2006_v14 }
0x1239   :  { %3845 = vmatprep.subr.bf16.mxu1 %v3844_v16 }
0x123a   :  { %3847 = vmatpush3.bf16.msra.mxu1 %v3844_v16 }
0x123d   :  { %3571 = vmatmul.mubr.msk.f32.vlgmr.msra.gmra.mrb[36].mxu1 %vm90_vm4, %v2005_v20 }
0x123e   :  { %3573 = vmatprep.mubr.msk.f32.mxu1 %vm90_vm4, %v2006_v14 }
0x1241   :  { %3574 = vmatmul.mubr.msk.f32.gmra.mrb[38].mxu1 %vm90_vm4, %v2007_v29 }
0x1310   :  { %v3572_v17 = vpop.f32.mrb[36].mxu1 }
0x1311   :  { %v2108_v18 = vsel %vm4500_vm5, %v3572_v17, %v2005_v20  ;;  %v2086_v23 = vpop.f32.mrb[37].mxu1  ;;  %vm4511_vm5 = vmmov %vm4509_vm0 }
0x1312   :  { %v2107_v25 = vsel %vm4501_vm6, %v2086_v23, %v2004_v15  ;;  %vm4512_vm6 = vcmp.gt.f32.partialorder %v4056_v43, 1024.0 }
0x1313   :  { %3584 = vmatprep.mubr.msk.f32.mxu0 %vm90_vm4, %v2107_v25  ;;  %v3848_v26 = vpack.c.bf16 %v2108_v18, %v2107_v25 }
0x1314   :  { %v3575_v27 = vpop.f32.mrb[38].mxu1 }
0x1315   :  { %v2110_v28 = vsel %vm4502_vm8, %v3575_v27, %v2007_v29  ;;  %v2096_v3 = vpop.f32.mrb[39].mxu1  ;;  %3849 = vmatprep.subr.bf16.mxu0 %v3848_v26  ;;  %vm4513_vm8 = vmmov %vm4512_vm6 }
0x1316   :  { %v2109_v30 = vsel %vm4503_vm9, %v2096_v3, %v2006_v14  ;;  %3851 = vmatpush3.bf16.msra.mxu0 %v3848_v26  ;;  %vm4514_vm9 = vmmov %vm4512_vm6 }
0x1317   :  { %v3852_v1 = vpack.c.bf16 %v2110_v28, %v2109_v30 }
0x1319   :  { %3853 = vmatprep.subr.bf16.mxu0 %v3852_v1 }
0x131a   :  { %3855 = vmatpush3.bf16.msra.mxu0 %v3852_v1 }
0x131d   :  { %3585 = vmatmul.mubr.msk.f32.vlgmr.msra.gmra.mrb[40].mxu0 %vm90_vm4, %v2108_v18 }
0x131e   :  { %3587 = vmatprep.mubr.msk.f32.mxu0 %vm90_vm4, %v2109_v30 }
0x1321   :  { %3588 = vmatmul.mubr.msk.f32.gmra.mrb[42].mxu0 %vm90_vm4, %v2110_v28 }
0x13f0   :  { %v3586_v32 = vpop.f32.mrb[40].mxu0 }
0x13f1   :  { %v2211_v33 = vsel %vm4504_vm11, %v3586_v32, %v2108_v18  ;;  %v2189_v34 = vpop.f32.mrb[41].mxu0  ;;  %vm4515_vm11 = vmmov %vm4512_vm6 }
0x13f2   :  { %v2210_v35 = vsel %vm4505_vm12, %v2189_v34, %v2107_v25  ;;  %vm4516_vm12 = vcmp.gt.f32.partialorder %v4056_v43, 2048.0 }
0x13f3   :  { %3598 = vmatprep.mubr.msk.f32.mxu1 %vm90_vm4, %v2210_v35  ;;  %v3856_v36 = vpack.c.bf16 %v2211_v33, %v2210_v35 }
0x13f4   :  { %v3589_v10 = vpop.f32.mrb[42].mxu0 }
0x13f5   :  { %v2213_v2 = vsel %vm4506_vm13, %v3589_v10, %v2110_v28  ;;  %v2199_v6 = vpop.f32.mrb[43].mxu0  ;;  %3857 = vmatprep.subr.bf16.mxu1 %v3856_v36  ;;  %vm4517_vm13 = vmmov %vm4516_vm12 }
0x13f6   :  { %v2212_v37 = vsel %vm4507_vm14, %v2199_v6, %v2109_v30  ;;  %3859 = vmatpush3.bf16.msra.mxu1 %v3856_v36  ;;  %vm4518_vm14 = vmmov %vm4516_vm12 }
0x13f7   :  { %v3860_v38 = vpack.c.bf16 %v2213_v2, %v2212_v37 }
0x13f9   :  { %3861 = vmatprep.subr.bf16.mxu1 %v3860_v38 }
0x13fa   :  { %3863 = vmatpush3.bf16.msra.mxu1 %v3860_v38 }
0x13fd   :  { %3599 = vmatmul.mubr.msk.f32.vlgmr.msra.gmra.mrb[40].mxu1 %vm90_vm4, %v2211_v33 }
0x13fe   :  { %3601 = vmatprep.mubr.msk.f32.mxu1 %vm90_vm4, %v2212_v37 }
0x1401   :  { %3602 = vmatmul.mubr.msk.f32.gmra.mrb[42].mxu1 %vm90_vm4, %v2213_v2 }
0x14d0   :  { %v3600_v39 = vpop.f32.mrb[40].mxu1 }
0x14d1   :  { %v2314_v40 = vsel %vm4508_vm15, %v3600_v39, %v2211_v33  ;;  %v2292_v41 = vpop.f32.mrb[41].mxu1  ;;  %vm4519_vm15 = vmmov %vm4516_vm12 }
0x14d2   :  { %v2313_v42 = vsel %vm4509_vm0, %v2292_v41, %v2210_v35 }
0x14d3   :  { %3612 = vmatprep.mubr.msk.f32.mxu0 %vm90_vm4, %v2313_v42  ;;  %v3864_v44 = vpack.c.bf16 %v2314_v40, %v2313_v42 }
0x14d4   :  { %v3603_v45 = vpop.f32.mrb[42].mxu1 }
0x14d5   :  { %v2316_v46 = vsel %vm4510_vm1, %v3603_v45, %v2213_v2  ;;  %v2302_v47 = vpop.f32.mrb[43].mxu1  ;;  %3865 = vmatprep.subr.bf16.mxu0 %v3864_v44 }
0x14d6   :  { %v2315_v48 = vsel %vm4511_vm5, %v2302_v47, %v2212_v37  ;;  %3867 = vmatpush3.bf16.msra.mxu0 %v3864_v44 }
0x14d7   :  { %v3868_v49 = vpack.c.bf16 %v2316_v46, %v2315_v48 }
0x14d9   :  { %3869 = vmatprep.subr.bf16.mxu0 %v3868_v49 }
0x14da   :  { %3871 = vmatpush3.bf16.msra.mxu0 %v3868_v49 }
0x14dd   :  { %3613 = vmatmul.mubr.msk.f32.vlgmr.msra.gmra.mrb[44].mxu0 %vm90_vm4, %v2314_v40 }
0x14de   :  { %3615 = vmatprep.mubr.msk.f32.mxu0 %vm90_vm4, %v2315_v48 }
0x14e1   :  { %3616 = vmatmul.mubr.msk.f32.gmra.mrb[46].mxu0 %vm90_vm4, %v2316_v46 }
0x15b0   :  { %v3614_v50 = vpop.f32.mrb[44].mxu0 }
0x15b1   :  { %v2417_v19 = vsel %vm4512_vm6, %v3614_v50, %v2314_v40  ;;  %v2395_v51 = vpop.f32.mrb[45].mxu0 }
0x15b2   :  { %v2416_v52 = vsel %vm4513_vm8, %v2395_v51, %v2313_v42 }
0x15b3   :  { %3626 = vmatprep.mubr.msk.f32.mxu1 %vm90_vm4, %v2416_v52  ;;  %v3872_v53 = vpack.c.bf16 %v2417_v19, %v2416_v52 }
0x15b4   :  { %v3617_v54 = vpop.f32.mrb[46].mxu0 }
0x15b5   :  { %v2419_v55 = vsel %vm4514_vm9, %v3617_v54, %v2316_v46  ;;  %v2405_v56 = vpop.f32.mrb[47].mxu0  ;;  %3873 = vmatprep.subr.bf16.mxu1 %v3872_v53 }
0x15b6   :  { %v2418_v57 = vsel %vm4515_vm11, %v2405_v56, %v2315_v48  ;;  %3875 = vmatpush3.bf16.msra.mxu1 %v3872_v53 }
0x15b7   :  { %v3876_v58 = vpack.c.bf16 %v2419_v55, %v2418_v57 }
0x15b9   :  { %3877 = vmatprep.subr.bf16.mxu1 %v3876_v58 }
0x15ba   :  { %3879 = vmatpush3.bf16.msra.mxu1 %v3876_v58 }
0x15bd   :  { %3627 = vmatmul.mubr.msk.f32.vlgmr.msra.gmra.mrb[44].mxu1 %vm90_vm4, %v2417_v19 }
0x15be   :  { %3629 = vmatprep.mubr.msk.f32.mxu1 %vm90_vm4, %v2418_v57 }
0x15c1   :  { %3630 = vmatmul.mubr.msk.f32.gmra.mrb[46].mxu1 %vm90_vm4, %v2419_v55 }
0x1690   :  { %v3628_v59 = vpop.f32.mrb[44].mxu1 }
0x1691   :  { %v2520_v60 = vsel %vm4516_vm12, %v3628_v59, %v2417_v19  ;;  %v2498_v61 = vpop.f32.mrb[45].mxu1 }
0x1692   :  { %v2519_v62 = vsel %vm4517_vm13, %v2498_v61, %v2416_v52 }
0x1693   :  { %3640 = vmatprep.mubr.msk.f32.mxu0 %vm90_vm4, %v2519_v62  ;;  %v3880_v63 = vpack.c.bf16 %v2520_v60, %v2519_v62 }
0x1694   :  { %v3631_v0 = vpop.f32.mrb[46].mxu1 }
0x1695   :  { %v2522_v4 = vsel %vm4518_vm14, %v3631_v0, %v2419_v55  ;;  %v2508_v5 = vpop.f32.mrb[47].mxu1  ;;  %3881 = vmatprep.subr.bf16.mxu0 %v3880_v63 }
0x1696   :  { %v2521_v7 = vsel %vm4519_vm15, %v2508_v5, %v2418_v57  ;;  %3883 = vmatpush3.bf16.msra.mxu0 %v3880_v63 }
0x1697   :  { %v3884_v8 = vpack.c.bf16 %v2522_v4, %v2521_v7 }
0x1699   :  { %3885 = vmatprep.subr.bf16.mxu0 %v3884_v8 }
0x169a   :  { %3887 = vmatpush3.bf16.msra.mxu0 %v3884_v8 }
0x169d   :  { %3641 = vmatmul.mubr.msk.f32.vlgmr.msra.gmra.mrb[48].mxu0 %vm90_vm4, %v2520_v60 }
0x169e   :  { %3643 = vmatprep.mubr.msk.f32.mxu0 %vm90_vm4, %v2521_v7 }
0x16a1   :  { %3644 = vmatmul.mubr.msk.f32.gmra.mrb[50].mxu0 %vm90_vm4, %v2522_v4 }
0x1770   :  { %v3642_v9 = vpop.f32.mrb[48].mxu0 }
0x1771   :  { %v2623_v11 = vsel %vm147_vm3, %v3642_v9, %v2520_v60  ;;  %v2601_v12 = vpop.f32.mrb[49].mxu0 }
0x1772   :  { %v2622_v13 = vsel %vm147_vm3, %v2601_v12, %v2519_v62 }
0x1773   :  { %3654 = vmatprep.mubr.msk.f32.mxu1 %vm90_vm4, %v2622_v13  ;;  %v3888_v20 = vpack.c.bf16 %v2623_v11, %v2622_v13 }
0x1774   :  { %v3645_v21 = vpop.f32.mrb[50].mxu0 }
0x1775   :  { %v2625_v15 = vsel %vm147_vm3, %v3645_v21, %v2522_v4  ;;  %v2611_v22 = vpop.f32.mrb[51].mxu0  ;;  %3889 = vmatprep.subr.bf16.mxu1 %v3888_v20 }
0x1776   :  { %v2624_v24 = vsel %vm147_vm3, %v2611_v22, %v2521_v7  ;;  %3891 = vmatpush3.bf16.msra.mxu1 %v3888_v20 }
0x1777   :  { %v3892_v29 = vpack.c.bf16 %v2625_v15, %v2624_v24 }
0x1779   :  { %3893 = vmatprep.subr.bf16.mxu1 %v3892_v29 }
0x177a   :  { %3895 = vmatpush3.bf16.msra.mxu1 %v3892_v29 }
0x177d   :  { %3655 = vmatmul.mubr.msk.f32.vlgmr.msra.gmra.mrb[48].mxu1 %vm90_vm4, %v2623_v11 }
0x177e   :  { %3657 = vmatprep.mubr.msk.f32.mxu1 %vm90_vm4, %v2624_v24 }
0x1781   :  { %3658 = vmatmul.mubr.msk.f32.gmra.mrb[50].mxu1 %vm90_vm4, %v2625_v15 }
0x1850   :  { %v3656_v31 = vpop.f32.mrb[48].mxu1 }
0x1851   :  { %v2726_v14 = vsel %vm150_vm7, %v3656_v31, %v2623_v11  ;;  %v2704_v16 = vpop.f32.mrb[49].mxu1 }
0x1852   :  { %v2725_v17 = vsel %vm150_vm7, %v2704_v16, %v2622_v13 }
0x1853   :  { %3668 = vmatprep.mubr.msk.f32.mxu0 %vm90_vm4, %v2725_v17  ;;  %v3896_v18 = vpack.c.bf16 %v2726_v14, %v2725_v17 }
0x1854   :  { %v3659_v23 = vpop.f32.mrb[50].mxu1 }
0x1855   :  { %v2728_v25 = vsel %vm150_vm7, %v3659_v23, %v2625_v15  ;;  %v2714_v26 = vpop.f32.mrb[51].mxu1  ;;  %3897 = vmatprep.subr.bf16.mxu0 %v3896_v18 }
0x1856   :  { %v2727_v27 = vsel %vm150_vm7, %v2714_v26, %v2624_v24  ;;  %3899 = vmatpush3.bf16.msra.mxu0 %v3896_v18 }
0x1857   :  { %v3900_v28 = vpack.c.bf16 %v2728_v25, %v2727_v27 }
0x1859   :  { %3901 = vmatprep.subr.bf16.mxu0 %v3900_v28 }
0x185a   :  { %3903 = vmatpush3.bf16.msra.mxu0 %v3900_v28 }
0x185d   :  { %3669 = vmatmul.mubr.msk.f32.vlgmr.msra.gmra.mrb[52].mxu0 %vm90_vm4, %v2726_v14 }
0x185e   :  { %3671 = vmatprep.mubr.msk.f32.mxu0 %vm90_vm4, %v2727_v27 }
0x1861   :  { %3672 = vmatmul.mubr.msk.f32.gmra.mrb[54].mxu0 %vm90_vm4, %v2728_v25 }
0x1930   :  { %v3670_v3 = vpop.f32.mrb[52].mxu0 }
0x1931   :  { %v2829_v30 = vsel %vm153_vm10, %v3670_v3, %v2726_v14  ;;  %v2807_v1 = vpop.f32.mrb[53].mxu0 }
0x1932   :  { %v2828_v32 = vsel %vm153_vm10, %v2807_v1, %v2725_v17 }
0x1933   :  { %3682 = vmatprep.mubr.msk.f32.mxu1 %vm90_vm4, %v2828_v32  ;;  %v3904_v33 = vpack.c.bf16 %v2829_v30, %v2828_v32 }
0x1934   :  { %v3673_v34 = vpop.f32.mrb[54].mxu0 }
0x1935   :  { %v2831_v35 = vsel %vm153_vm10, %v3673_v34, %v2728_v25  ;;  %v2817_v36 = vpop.f32.mrb[55].mxu0  ;;  %3905 = vmatprep.subr.bf16.mxu1 %v3904_v33 }
0x1936   :  { %v2830_v10 = vsel %vm153_vm10, %v2817_v36, %v2727_v27  ;;  %3907 = vmatpush3.bf16.msra.mxu1 %v3904_v33 }
0x1937   :  { %v3908_v2 = vpack.c.bf16 %v2831_v35, %v2830_v10 }
0x1939   :  { %3909 = vmatprep.subr.bf16.mxu1 %v3908_v2 }
0x193a   :  { %3911 = vmatpush3.bf16.msra.mxu1 %v3908_v2 }
0x193d   :  { %3683 = vmatmul.mubr.msk.f32.vlgmr.msra.gmra.mrb[52].mxu1 %vm90_vm4, %v2829_v30 }
0x193e   :  { %3685 = vmatprep.mubr.msk.f32.mxu1 %vm90_vm4, %v2830_v10 }
0x1941   :  { %3686 = vmatmul.mubr.msk.f32.gmra.mrb[54].mxu1 %vm90_vm4, %v2831_v35 }
0x1a10   :  { %v3684_v6 = vpop.f32.mrb[52].mxu1 }
0x1a11   :  { %v2932_v37 = vsel %vm156_vm2, %v3684_v6, %v2829_v30  ;;  %v2910_v38 = vpop.f32.mrb[53].mxu1 }
0x1a12   :  { %2936 = vst.msk [vmem:[#allocation5 + $0x8] sm:$0xff] %vm90_vm4, %v2932_v37  ;;  %v2931_v39 = vsel %vm156_vm2, %v2910_v38, %v2828_v32 }
0x1a13   :  { %2935 = vst.msk [vmem:[#allocation5] sm:$0xff] %vm90_vm4, %v2931_v39 }
0x1a14   :  { %v3687_v40 = vpop.f32.mrb[54].mxu1 }
0x1a15   :  { %v2934_v41 = vsel %vm156_vm2, %v3687_v40, %v2831_v35  ;;  %v2920_v42 = vpop.f32.mrb[55].mxu1 }
0x1a16   :  { %2938 = vst.msk [vmem:[#allocation5 + $0x18] sm:$0xff] %vm90_vm4, %v2934_v41  ;;  %v2933_v44 = vsel %vm156_vm2, %v2920_v42, %v2830_v10 }
0x1a17   :  { %2937 = vst.msk [vmem:[#allocation5 + $0x10] sm:$0xff] %vm90_vm4, %v2933_v44 }
0x1a18   :  { %3952 = shalt.err (!%p3949_p12)
}
0x1a19   :  { %s3953_s24 = scalar_lea.hbm %s4494_s1, 512 }
0x1a1a   :  { %p3954_p13 = scmp.ne.s32.totalorder %s4494_s1, %s3953_s24  ;;  %p3957_p0 = scmp.lt.u32.totalorder %s3953_s24, %s4494_s1 }
0x1a1c   :  { %p3959_p1 = pnand %p3957_p0, %p3954_p13 }
0x1a1e   :  { %3962 = shalt.err (!%p3959_p1)
}
0x1a1f   :  { %2950 = dma.vmem_to_hbm [thread:$0]  %s2945_s20, 512, %s4494_s1, [#allocation4], %s3968_s16, %s3968_s16, %s3969_s17  }
0x1a20   :  { %3965 = dma.done.wait [#allocation4], 512  }
0x1a21   :  { %3966 = vsyncadd [#allocation4], 4294966784 }
0x1a22   :  { %2954 = vsyncpa [#allocation3], 1 }
0x1a23   :  { %2955 = vsyncpa [#allocation4], 1 }

</bundles_post_ra>
